<compile_context>
chip_gen: v7x
topology: tpu7x:2x2x1
jax: 0.10.0
libtpu: 0.0.40
codegen_flags: <defaults>
</compile_context>

<pallas_src>
import functools

import jax
import jax.numpy as jnp
from jax.experimental import pallas as pl
from jax.experimental.pallas import tpu as pltpu

LANE = 128  # TPU lane width


def _ceil_to(a, m):
    return -(-a // m) * m


# ---------------------------------------------------------------------------
# Kernel: one batch tile, full forward.  Matmuls on the MXU (bf16 in, f32 acc
# for the big ones; f32 for the tiny final layer); bias/ReLU/select on the VPU.
# ---------------------------------------------------------------------------
def dann_kernel(x_ref, w1_ref, b1_ref, w2_ref, b2_ref,
                wh_ref, bh_ref, wd2_ref, bd2_ref, mask_ref, out_ref):
    # FeatureExtractor: Linear(310,128)+ReLU, Linear(128,64)+ReLU
    x = x_ref[...].astype(jnp.bfloat16)          # in-kernel cast: no HBM copy
    h1 = jnp.dot(x, w1_ref[...], preferred_element_type=jnp.float32) + b1_ref[...]
    h1 = jnp.maximum(h1, 0.0).astype(jnp.bfloat16)
    feat = jnp.dot(h1, w2_ref[...], preferred_element_type=jnp.float32) + b2_ref[...]
    feat = jnp.maximum(feat, 0.0).astype(jnp.bfloat16)

    # Fused heads: one [64,128] matmul.
    #   lanes 0:L     -> label logits (no ReLU)
    #   lanes L:L+DH  -> domain-hidden pre-activation (Wd1)
    #   remaining     -> exact zeros (padded weights/biases)
    heads = jnp.dot(feat, wh_ref[...], preferred_element_type=jnp.float32) + bh_ref[...]

    # GradientReversalLayer is identity in the forward pass.  ReLU over the
    # whole slab is safe: wd2 rows outside the domain-hidden lanes are zero.
    # Keep this tiny matmul in f32 (saves a [TB,128] bf16 pack per step).
    hd = jnp.maximum(heads, 0.0)
    dom = jnp.dot(hd, wd2_ref[...], preferred_element_type=jnp.float32) + bd2_ref[...]

    # Lane-dense fused bf16 output: mask is 1.0 on label lanes, 0 elsewhere;
    # dom is exactly zero on label lanes -> single FMA select.
    out_ref[...] = (dom + heads * mask_ref[...]).astype(out_ref.dtype)


# ---------------------------------------------------------------------------
# Parameter packing: pad / fuse / cast ONCE, outside the hot path.
# ---------------------------------------------------------------------------
def pack_params(params, lane=LANE):
    w1, b1 = params["w1"], params["b1"]          # [310,128], [1,128]
    w2, b2 = params["w2"], params["b2"]          # [128, 64], [1, 64]
    H2 = w2.shape[1]
    L = params["wl"].shape[1]                    # 3
    DH = params["wd1"].shape[1]                  # 32
    Dout = params["wd2"].shape[1]                # 2
    assert L + DH <= lane and L + Dout <= lane

    # Fused head weight: [H2, 128] = [ Wl | Wd1 | 0 ]
    wh = jnp.zeros((H2, lane), jnp.float32)
    wh = wh.at[:, :L].set(params["wl"]).at[:, L:L + DH].set(params["wd1"])
    bh = jnp.zeros((1, lane), jnp.float32)
    bh = bh.at[:, :L].set(params["bl"]).at[:, L:L + DH].set(params["bd1"])

    # Final domain layer padded to [128,128] (f32): rows L:L+DH, cols L:L+Dout.
    wd2p = jnp.zeros((lane, lane), jnp.float32)
    wd2p = wd2p.at[L:L + DH, L:L + Dout].set(params["wd2"])
    bd2p = jnp.zeros((1, lane), jnp.float32)
    bd2p = bd2p.at[:, L:L + Dout].set(params["bd2"])

    # Grid-invariant lane-select mask (1.0 on label lanes).
    mask = (jnp.arange(lane) < L).astype(jnp.float32).reshape(1, lane)

    packed = dict(
        w1=w1.astype(jnp.bfloat16), b1=b1.reshape(1, -1).astype(jnp.float32),
        w2=w2.astype(jnp.bfloat16), b2=b2.reshape(1, -1).astype(jnp.float32),
        wh=wh.astype(jnp.bfloat16), bh=bh,
        wd2=wd2p, bd2=bd2p, mask=mask)
    return packed, (L, DH, Dout)


# ---------------------------------------------------------------------------
# Tile chooser: >=2 and an even number of batch tiles (both v7x TCs busy),
# TB a multiple of 8, capped by `tb` (sweep 512-2048 on real workloads).
# ---------------------------------------------------------------------------
def _choose_tiling(B, tb):
    B8 = max(8, _ceil_to(B, 8))
    if B8 <= 8:
        return 8, 1
    n = max(2, -(-B8 // tb))
    n = _ceil_to(n, 2)
    TB = _ceil_to(-(-B8 // n), 8)
    n = -(-B8 // TB)
    if n > 1 and n % 2:
        n += 1
    return TB, n


# ---------------------------------------------------------------------------
# Hot-path forward over pre-packed params.
# ---------------------------------------------------------------------------
def _dann_forward_packed(x, packed, *, dims, tb=1024, single_buffer_weights=True):
    L, DH, Dout = dims
    B, K = x.shape
    TB, n_tiles = _choose_tiling(B, tb)
    Bp = TB * n_tiles
    # Pad batch rows only (no K pad, no f32->bf16 materialization); skipped
    # entirely when B is already a tile multiple.
    xp = x if Bp == B else jnp.pad(x, ((0, Bp - B), (0, 0)))

    H1 = packed["w1"].shape[1]
    H2 = packed["w2"].shape[1]

    if single_buffer_weights:
        def const(shape):
            return pl.BlockSpec(shape, lambda i: (0, 0),
                                pipeline_mode=pl.Buffered(1))
    else:
        def const(shape):
            return pl.BlockSpec(shape, lambda i: (0, 0))

    in_specs = [
        pl.BlockSpec((TB, K), lambda i: (i, 0)),   # x tile (pipelined DMA)
        const((K, H1)), const((1, H1)),            # W1, b1 (VMEM-resident)
        const((H1, H2)), const((1, H2)),           # W2, b2
        const((H2, LANE)), const((1, LANE)),       # fused heads
        const((LANE, LANE)), const((1, LANE)),     # padded final domain layer
        const((1, LANE)),                          # label-lane mask
    ]
    out_spec = pl.BlockSpec((TB, LANE), lambda i: (i, 0))

    operands = (xp,
                packed["w1"], packed["b1"],
                packed["w2"], packed["b2"],
                packed["wh"], packed["bh"],
                packed["wd2"], packed["bd2"],
                packed["mask"])

    flops = 2 * Bp * (K * H1 + H1 * H2 + H2 * LANE + LANE * LANE)
    bytes_accessed = int(sum(int(a.size) * a.dtype.itemsize for a in operands)
                         + Bp * LANE * 2)

    out = pl.pallas_call(
        dann_kernel,
        out_shape=jax.ShapeDtypeStruct((Bp, LANE), jnp.bfloat16),
        grid=(n_tiles,),
        in_specs=in_specs,
        out_specs=out_spec,
        compiler_params=pltpu.CompilerParams(
            dimension_semantics=("parallel",)),      # shards across v7x's 2 TCs
        cost_estimate=pl.CostEstimate(flops=int(flops), transcendentals=0,
                                      bytes_accessed=bytes_accessed),
    )(*operands)

    label_preds = out[:B, :L].astype(jnp.float32)
    domain_preds = out[:B, L:L + Dout].astype(jnp.float32)
    return label_preds, domain_preds


def make_dann_forward(params, *, tb=1024, single_buffer_weights=True):
    """Pack params once; return a jitted forward closure over x."""
    packed, dims = pack_params(params)
    fwd = jax.jit(functools.partial(
        _dann_forward_packed, dims=dims, tb=tb,
        single_buffer_weights=single_buffer_weights))
    return lambda x: fwd(x, packed)


# ---------------------------------------------------------------------------
# Deterministic parameter init (nn.Linear shapes, stored as [in, out]).
# ---------------------------------------------------------------------------
def init_params(key, input_dim=310, feature_hidden_dims=(128, 64),
                label_output_dim=3, domain_hidden_dims=(32,), domain_output_dim=2):
    keys = jax.random.split(key, 10)

    def linear(kw, kb, fan_in, fan_out):
        bound = 1.0 / jnp.sqrt(fan_in)
        w = jax.random.uniform(kw, (fan_in, fan_out), jnp.float32, -bound, bound)
        b = jax.random.uniform(kb, (1, fan_out), jnp.float32, -bound, bound)
        return w, b

    h1, h2 = feature_hidden_dims
    dh = domain_hidden_dims[0]
    w1, b1 = linear(keys[0], keys[1], input_dim, h1)
    w2, b2 = linear(keys[2], keys[3], h1, h2)
    wl, bl = linear(keys[4], keys[5], h2, label_output_dim)
    wd1, bd1 = linear(keys[6], keys[7], h2, dh)
    wd2, bd2 = linear(keys[8], keys[9], dh, domain_output_dim)
    return dict(w1=w1, b1=b1, w2=w2, b2=b2, wl=wl, bl=bl,
                wd1=wd1, bd1=bd1, wd2=wd2, bd2=bd2)


def dann_forward_ref(x, p):
    """Pure-JAX reference matching the kernel's precision choices."""
    bf = lambda a: a.astype(jnp.bfloat16)
    dot_bf = lambda a, b: jnp.dot(bf(a), bf(b), preferred_element_type=jnp.float32)
    h1 = jnp.maximum(dot_bf(x, p["w1"]) + p["b1"], 0.0)
    feat = jnp.maximum(dot_bf(h1, p["w2"]) + p["b2"], 0.0)
    label = dot_bf(feat, p["wl"]) + p["bl"]
    # GradientReversalLayer: identity in forward.
    hd = jnp.maximum(dot_bf(feat, p["wd1"]) + p["bd1"], 0.0)
    domain = jnp.dot(hd, p["wd2"], preferred_element_type=jnp.float32) + p["bd2"]
    return label, domain


if __name__ == "__main__":
    key = jax.random.PRNGKey(0)
    kx, kp = jax.random.split(key)

    B, INPUT_DIM = 64, 310
    x = jax.random.normal(kx, (B, INPUT_DIM), dtype=jnp.float32)
    params = init_params(kp, input_dim=INPUT_DIM)

    try:
        # Default tb=1024 -> tile chooser gives 2 tiles of 32 here (exercises
        # the pipelined, TC-parallel grid without shipping a tiny tile size).
        fwd = make_dann_forward(params)
        label_preds, domain_preds = fwd(x)
        jax.block_until_ready((label_preds, domain_preds))
    except Exception:
        # pl.Buffered(1) single-buffering of the resident weights is a minor
        # optimization; fall back to default double-buffering if this JAX
        # build rejects the pipeline_mode hint.
        fwd = make_dann_forward(params, single_buffer_weights=False)
        label_preds, domain_preds = fwd(x)
        jax.block_until_ready((label_preds, domain_preds))

    label_ref, domain_ref = dann_forward_ref(x, params)
    assert label_preds.shape == (B, 3) and domain_preds.shape == (B, 2)
    # Kernel output is bf16-rounded (lane-dense bf16 slab) -> slightly looser tol.
    assert jnp.allclose(label_preds, label_ref, atol=2e-2, rtol=2e-2)
    assert jnp.allclose(domain_preds, domain_ref, atol=2e-2, rtol=2e-2)

    print("KERNEL_OK")
</pallas_src>

<mosaic_0001>
module attributes {stable_mosaic.version = 11 : i64} {
  func.func @dann_kernel(%arg0: i32, %arg1: memref<32x310xf32, #tpu.memory_space<vmem>>, %arg2: memref<310x128xbf16, #tpu.memory_space<vmem>>, %arg3: memref<1x128xf32, #tpu.memory_space<vmem>>, %arg4: memref<128x64xbf16, #tpu.memory_space<vmem>>, %arg5: memref<1x64xf32, #tpu.memory_space<vmem>>, %arg6: memref<64x128xbf16, #tpu.memory_space<vmem>>, %arg7: memref<1x128xf32, #tpu.memory_space<vmem>>, %arg8: memref<128x128xf32, #tpu.memory_space<vmem>>, %arg9: memref<1x128xf32, #tpu.memory_space<vmem>>, %arg10: memref<1x128xf32, #tpu.memory_space<vmem>>, %arg11: memref<32x128xbf16, #tpu.memory_space<vmem>>) attributes {dimension_semantics = [#tpu.dimension_semantics<parallel>], iteration_bounds = array<i64: 2>, scalar_prefetch = 0 : i64, scratch_operands = 0 : i64, tpu.core_type = #tpu.core_type<tc>, window_params = [{transform_indices = @transform_0, window_bounds = array<i64: 32, 310>}, {pipeline_mode = #tpu.pipeline_mode<synchronous>, transform_indices = @transform_1, window_bounds = array<i64: 310, 128>}, {pipeline_mode = #tpu.pipeline_mode<synchronous>, transform_indices = @transform_2, window_bounds = array<i64: 1, 128>}, {pipeline_mode = #tpu.pipeline_mode<synchronous>, transform_indices = @transform_3, window_bounds = array<i64: 128, 64>}, {pipeline_mode = #tpu.pipeline_mode<synchronous>, transform_indices = @transform_4, window_bounds = array<i64: 1, 64>}, {pipeline_mode = #tpu.pipeline_mode<synchronous>, transform_indices = @transform_5, window_bounds = array<i64: 64, 128>}, {pipeline_mode = #tpu.pipeline_mode<synchronous>, transform_indices = @transform_6, window_bounds = array<i64: 1, 128>}, {pipeline_mode = #tpu.pipeline_mode<synchronous>, transform_indices = @transform_7, window_bounds = array<i64: 128, 128>}, {pipeline_mode = #tpu.pipeline_mode<synchronous>, transform_indices = @transform_8, window_bounds = array<i64: 1, 128>}, {pipeline_mode = #tpu.pipeline_mode<synchronous>, transform_indices = @transform_9, window_bounds = array<i64: 1, 128>}, {transform_indices = @transform_10, window_bounds = array<i64: 32, 128>}]} {
    %c0 = arith.constant 0 : index
    %c0_0 = arith.constant 0 : index
    %0 = vector.load %arg1[%c0, %c0_0] : memref<32x310xf32, #tpu.memory_space<vmem>>, vector<32x310xf32>
    %1 = arith.truncf %0 : vector<32x310xf32> to vector<32x310xbf16>
    %c0_1 = arith.constant 0 : index
    %c0_2 = arith.constant 0 : index
    %2 = vector.load %arg2[%c0_1, %c0_2] : memref<310x128xbf16, #tpu.memory_space<vmem>>, vector<310x128xbf16>
    %cst = arith.constant dense<0.000000e+00> : vector<32x128xf32>
    %3 = tpu.matmul %1, %2, %cst {dimension_numbers = #tpu.dot_dimension_numbers<[1], [0], [0], [1], [0, 0, 1, 1], [], []>} : vector<32x310xbf16>, vector<310x128xbf16>, vector<32x128xf32> -> vector<32x128xf32>
    %c0_3 = arith.constant 0 : index
    %c0_4 = arith.constant 0 : index
    %4 = vector.load %arg3[%c0_3, %c0_4] : memref<1x128xf32, #tpu.memory_space<vmem>>, vector<1x128xf32>
    %5 = vector.broadcast %4 : vector<1x128xf32> to vector<32x128xf32>
    %6 = arith.addf %3, %5 : vector<32x128xf32>
    %cst_5 = arith.constant 0.000000e+00 : f32
    %7 = vector.broadcast %cst_5 : f32 to vector<32x128xf32>
    %8 = arith.maximumf %6, %7 : vector<32x128xf32>
    %9 = arith.truncf %8 : vector<32x128xf32> to vector<32x128xbf16>
    %c0_6 = arith.constant 0 : index
    %c0_7 = arith.constant 0 : index
    %10 = vector.load %arg4[%c0_6, %c0_7] : memref<128x64xbf16, #tpu.memory_space<vmem>>, vector<128x64xbf16>
    %cst_8 = arith.constant dense<0.000000e+00> : vector<32x64xf32>
    %11 = tpu.matmul %9, %10, %cst_8 {dimension_numbers = #tpu.dot_dimension_numbers<[1], [0], [0], [1], [0, 0, 1, 1], [], []>} : vector<32x128xbf16>, vector<128x64xbf16>, vector<32x64xf32> -> vector<32x64xf32>
    %c0_9 = arith.constant 0 : index
    %c0_10 = arith.constant 0 : index
    %12 = vector.load %arg5[%c0_9, %c0_10] : memref<1x64xf32, #tpu.memory_space<vmem>>, vector<1x64xf32>
    %13 = vector.broadcast %12 : vector<1x64xf32> to vector<32x64xf32>
    %14 = arith.addf %11, %13 : vector<32x64xf32>
    %cst_11 = arith.constant 0.000000e+00 : f32
    %15 = vector.broadcast %cst_11 : f32 to vector<32x64xf32>
    %16 = arith.maximumf %14, %15 : vector<32x64xf32>
    %17 = arith.truncf %16 : vector<32x64xf32> to vector<32x64xbf16>
    %c0_12 = arith.constant 0 : index
    %c0_13 = arith.constant 0 : index
    %18 = vector.load %arg6[%c0_12, %c0_13] : memref<64x128xbf16, #tpu.memory_space<vmem>>, vector<64x128xbf16>
    %cst_14 = arith.constant dense<0.000000e+00> : vector<32x128xf32>
    %19 = tpu.matmul %17, %18, %cst_14 {dimension_numbers = #tpu.dot_dimension_numbers<[1], [0], [0], [1], [0, 0, 1, 1], [], []>} : vector<32x64xbf16>, vector<64x128xbf16>, vector<32x128xf32> -> vector<32x128xf32>
    %c0_15 = arith.constant 0 : index
    %c0_16 = arith.constant 0 : index
    %20 = vector.load %arg7[%c0_15, %c0_16] : memref<1x128xf32, #tpu.memory_space<vmem>>, vector<1x128xf32>
    %21 = vector.broadcast %20 : vector<1x128xf32> to vector<32x128xf32>
    %22 = arith.addf %19, %21 : vector<32x128xf32>
    %cst_17 = arith.constant 0.000000e+00 : f32
    %23 = vector.broadcast %cst_17 : f32 to vector<32x128xf32>
    %24 = arith.maximumf %22, %23 : vector<32x128xf32>
    %c0_18 = arith.constant 0 : index
    %c0_19 = arith.constant 0 : index
    %25 = vector.load %arg8[%c0_18, %c0_19] : memref<128x128xf32, #tpu.memory_space<vmem>>, vector<128x128xf32>
    %cst_20 = arith.constant dense<0.000000e+00> : vector<32x128xf32>
    %26 = tpu.matmul %24, %25, %cst_20 {dimension_numbers = #tpu.dot_dimension_numbers<[1], [0], [0], [1], [0, 0, 1, 1], [], []>} : vector<32x128xf32>, vector<128x128xf32>, vector<32x128xf32> -> vector<32x128xf32>
    %c0_21 = arith.constant 0 : index
    %c0_22 = arith.constant 0 : index
    %27 = vector.load %arg9[%c0_21, %c0_22] : memref<1x128xf32, #tpu.memory_space<vmem>>, vector<1x128xf32>
    %28 = vector.broadcast %27 : vector<1x128xf32> to vector<32x128xf32>
    %29 = arith.addf %26, %28 : vector<32x128xf32>
    %c0_23 = arith.constant 0 : index
    %c0_24 = arith.constant 0 : index
    %30 = vector.load %arg10[%c0_23, %c0_24] : memref<1x128xf32, #tpu.memory_space<vmem>>, vector<1x128xf32>
    %31 = vector.broadcast %30 : vector<1x128xf32> to vector<32x128xf32>
    %32 = arith.mulf %22, %31 : vector<32x128xf32>
    %33 = arith.addf %29, %32 : vector<32x128xf32>
    %34 = arith.truncf %33 : vector<32x128xf32> to vector<32x128xbf16>
    %c0_25 = arith.constant 0 : index
    %c0_26 = arith.constant 0 : index
    %35 = vector.load %arg11[%c0_25, %c0_26] : memref<32x128xbf16, #tpu.memory_space<vmem>>, vector<32x128xbf16>
    tpu.vector_store %arg11[%c0_25, %c0_26], %34 {strides = array<i32>} : memref<32x128xbf16, #tpu.memory_space<vmem>>, vector<32x128xbf16>,
    return
  }
  func.func @transform_0(%arg0: i32) -> (i32, i32) {
    %c0_i32 = arith.constant 0 : i32
    %c0_i32_0 = arith.constant 0 : i32
    return %arg0, %c0_i32 : i32, i32
  }
  func.func @transform_1(%arg0: i32) -> (i32, i32) {
    %c0_i32 = arith.constant 0 : i32
    %c0_i32_0 = arith.constant 0 : i32
    %c0_i32_1 = arith.constant 0 : i32
    return %c0_i32, %c0_i32_0 : i32, i32
  }
  func.func @transform_2(%arg0: i32) -> (i32, i32) {
    %c0_i32 = arith.constant 0 : i32
    %c0_i32_0 = arith.constant 0 : i32
    %c0_i32_1 = arith.constant 0 : i32
    return %c0_i32, %c0_i32_0 : i32, i32
  }
  func.func @transform_3(%arg0: i32) -> (i32, i32) {
    %c0_i32 = arith.constant 0 : i32
    %c0_i32_0 = arith.constant 0 : i32
    %c0_i32_1 = arith.constant 0 : i32
    return %c0_i32, %c0_i32_0 : i32, i32
  }
  func.func @transform_4(%arg0: i32) -> (i32, i32) {
    %c0_i32 = arith.constant 0 : i32
    %c0_i32_0 = arith.constant 0 : i32
    %c0_i32_1 = arith.constant 0 : i32
    return %c0_i32, %c0_i32_0 : i32, i32
  }
  func.func @transform_5(%arg0: i32) -> (i32, i32) {
    %c0_i32 = arith.constant 0 : i32
    %c0_i32_0 = arith.constant 0 : i32
    %c0_i32_1 = arith.constant 0 : i32
    return %c0_i32, %c0_i32_0 : i32, i32
  }
  func.func @transform_6(%arg0: i32) -> (i32, i32) {
    %c0_i32 = arith.constant 0 : i32
    %c0_i32_0 = arith.constant 0 : i32
    %c0_i32_1 = arith.constant 0 : i32
    return %c0_i32, %c0_i32_0 : i32, i32
  }
  func.func @transform_7(%arg0: i32) -> (i32, i32) {
    %c0_i32 = arith.constant 0 : i32
    %c0_i32_0 = arith.constant 0 : i32
    %c0_i32_1 = arith.constant 0 : i32
    return %c0_i32, %c0_i32_0 : i32, i32
  }
  func.func @transform_8(%arg0: i32) -> (i32, i32) {
    %c0_i32 = arith.constant 0 : i32
    %c0_i32_0 = arith.constant 0 : i32
    %c0_i32_1 = arith.constant 0 : i32
    return %c0_i32, %c0_i32_0 : i32, i32
  }
  func.func @transform_9(%arg0: i32) -> (i32, i32) {
    %c0_i32 = arith.constant 0 : i32
    %c0_i32_0 = arith.constant 0 : i32
    %c0_i32_1 = arith.constant 0 : i32
    return %c0_i32, %c0_i32_0 : i32, i32
  }
  func.func @transform_10(%arg0: i32) -> (i32, i32) {
    %c0_i32 = arith.constant 0 : i32
    %c0_i32_0 = arith.constant 0 : i32
    return %arg0, %c0_i32 : i32, i32
  }
}

module attributes {stable_mosaic.version = 11 : i64} {
  func.func @dann_kernel(%arg0: i32, %arg1: memref<32x310xf32, #tpu.memory_space<vmem>>, %arg2: memref<310x128xbf16, #tpu.memory_space<vmem>>, %arg3: memref<1x128xf32, #tpu.memory_space<vmem>>, %arg4: memref<128x64xbf16, #tpu.memory_space<vmem>>, %arg5: memref<1x64xf32, #tpu.memory_space<vmem>>, %arg6: memref<64x128xbf16, #tpu.memory_space<vmem>>, %arg7: memref<1x128xf32, #tpu.memory_space<vmem>>, %arg8: memref<128x128xf32, #tpu.memory_space<vmem>>, %arg9: memref<1x128xf32, #tpu.memory_space<vmem>>, %arg10: memref<1x128xf32, #tpu.memory_space<vmem>>, %arg11: memref<32x128xbf16, #tpu.memory_space<vmem>>) attributes {dimension_semantics = [#tpu.dimension_semantics<parallel>], iteration_bounds = array<i64: 2>, scalar_prefetch = 0 : i64, scratch_operands = 0 : i64, tpu.core_type = #tpu.core_type<tc>, window_params = [{transform_indices = @transform_0, window_bounds = array<i64: 32, 310>}, {pipeline_mode = #tpu.pipeline_mode<synchronous>, transform_indices = @transform_1, window_bounds = array<i64: 310, 128>}, {pipeline_mode = #tpu.pipeline_mode<synchronous>, transform_indices = @transform_2, window_bounds = array<i64: 1, 128>}, {pipeline_mode = #tpu.pipeline_mode<synchronous>, transform_indices = @transform_3, window_bounds = array<i64: 128, 64>}, {pipeline_mode = #tpu.pipeline_mode<synchronous>, transform_indices = @transform_4, window_bounds = array<i64: 1, 64>}, {pipeline_mode = #tpu.pipeline_mode<synchronous>, transform_indices = @transform_5, window_bounds = array<i64: 64, 128>}, {pipeline_mode = #tpu.pipeline_mode<synchronous>, transform_indices = @transform_6, window_bounds = array<i64: 1, 128>}, {pipeline_mode = #tpu.pipeline_mode<synchronous>, transform_indices = @transform_7, window_bounds = array<i64: 128, 128>}, {pipeline_mode = #tpu.pipeline_mode<synchronous>, transform_indices = @transform_8, window_bounds = array<i64: 1, 128>}, {pipeline_mode = #tpu.pipeline_mode<synchronous>, transform_indices = @transform_9, window_bounds = array<i64: 1, 128>}, {transform_indices = @transform_10, window_bounds = array<i64: 32, 128>}]} {
    %c0 = arith.constant 0 : index
    %c0_0 = arith.constant 0 : index
    %0 = vector.load %arg1[%c0, %c0_0] : memref<32x310xf32, #tpu.memory_space<vmem>>, vector<32x310xf32>
    %1 = arith.truncf %0 : vector<32x310xf32> to vector<32x310xbf16>
    %c0_1 = arith.constant 0 : index
    %c0_2 = arith.constant 0 : index
    %2 = vector.load %arg2[%c0_1, %c0_2] : memref<310x128xbf16, #tpu.memory_space<vmem>>, vector<310x128xbf16>
    %cst = arith.constant dense<0.000000e+00> : vector<32x128xf32>
    %3 = tpu.matmul %1, %2, %cst {dimension_numbers = #tpu.dot_dimension_numbers<[1], [0], [0], [1], [0, 0, 1, 1], [], []>} : vector<32x310xbf16>, vector<310x128xbf16>, vector<32x128xf32> -> vector<32x128xf32>
    %c0_3 = arith.constant 0 : index
    %c0_4 = arith.constant 0 : index
    %4 = vector.load %arg3[%c0_3, %c0_4] : memref<1x128xf32, #tpu.memory_space<vmem>>, vector<1x128xf32>
    %5 = vector.broadcast %4 : vector<1x128xf32> to vector<32x128xf32>
    %6 = arith.addf %3, %5 : vector<32x128xf32>
    %cst_5 = arith.constant 0.000000e+00 : f32
    %7 = vector.broadcast %cst_5 : f32 to vector<32x128xf32>
    %8 = arith.maximumf %6, %7 : vector<32x128xf32>
    %9 = arith.truncf %8 : vector<32x128xf32> to vector<32x128xbf16>
    %c0_6 = arith.constant 0 : index
    %c0_7 = arith.constant 0 : index
    %10 = vector.load %arg4[%c0_6, %c0_7] : memref<128x64xbf16, #tpu.memory_space<vmem>>, vector<128x64xbf16>
    %cst_8 = arith.constant dense<0.000000e+00> : vector<32x64xf32>
    %11 = tpu.matmul %9, %10, %cst_8 {dimension_numbers = #tpu.dot_dimension_numbers<[1], [0], [0], [1], [0, 0, 1, 1], [], []>} : vector<32x128xbf16>, vector<128x64xbf16>, vector<32x64xf32> -> vector<32x64xf32>
    %c0_9 = arith.constant 0 : index
    %c0_10 = arith.constant 0 : index
    %12 = vector.load %arg5[%c0_9, %c0_10] : memref<1x64xf32, #tpu.memory_space<vmem>>, vector<1x64xf32>
    %13 = vector.broadcast %12 : vector<1x64xf32> to vector<32x64xf32>
    %14 = arith.addf %11, %13 : vector<32x64xf32>
    %cst_11 = arith.constant 0.000000e+00 : f32
    %15 = vector.broadcast %cst_11 : f32 to vector<32x64xf32>
    %16 = arith.maximumf %14, %15 : vector<32x64xf32>
    %17 = arith.truncf %16 : vector<32x64xf32> to vector<32x64xbf16>
    %c0_12 = arith.constant 0 : index
    %c0_13 = arith.constant 0 : index
    %18 = vector.load %arg6[%c0_12, %c0_13] : memref<64x128xbf16, #tpu.memory_space<vmem>>, vector<64x128xbf16>
    %cst_14 = arith.constant dense<0.000000e+00> : vector<32x128xf32>
    %19 = tpu.matmul %17, %18, %cst_14 {dimension_numbers = #tpu.dot_dimension_numbers<[1], [0], [0], [1], [0, 0, 1, 1], [], []>} : vector<32x64xbf16>, vector<64x128xbf16>, vector<32x128xf32> -> vector<32x128xf32>
    %c0_15 = arith.constant 0 : index
    %c0_16 = arith.constant 0 : index
    %20 = vector.load %arg7[%c0_15, %c0_16] : memref<1x128xf32, #tpu.memory_space<vmem>>, vector<1x128xf32>
    %21 = vector.broadcast %20 : vector<1x128xf32> to vector<32x128xf32>
    %22 = arith.addf %19, %21 : vector<32x128xf32>
    %cst_17 = arith.constant 0.000000e+00 : f32
    %23 = vector.broadcast %cst_17 : f32 to vector<32x128xf32>
    %24 = arith.maximumf %22, %23 : vector<32x128xf32>
    %c0_18 = arith.constant 0 : index
    %c0_19 = arith.constant 0 : index
    %25 = vector.load %arg8[%c0_18, %c0_19] : memref<128x128xf32, #tpu.memory_space<vmem>>, vector<128x128xf32>
    %cst_20 = arith.constant dense<0.000000e+00> : vector<32x128xf32>
    %26 = tpu.matmul %24, %25, %cst_20 {dimension_numbers = #tpu.dot_dimension_numbers<[1], [0], [0], [1], [0, 0, 1, 1], [], []>} : vector<32x128xf32>, vector<128x128xf32>, vector<32x128xf32> -> vector<32x128xf32>
    %c0_21 = arith.constant 0 : index
    %c0_22 = arith.constant 0 : index
    %27 = vector.load %arg9[%c0_21, %c0_22] : memref<1x128xf32, #tpu.memory_space<vmem>>, vector<1x128xf32>
    %28 = vector.broadcast %27 : vector<1x128xf32> to vector<32x128xf32>
    %29 = arith.addf %26, %28 : vector<32x128xf32>
    %c0_23 = arith.constant 0 : index
    %c0_24 = arith.constant 0 : index
    %30 = vector.load %arg10[%c0_23, %c0_24] : memref<1x128xf32, #tpu.memory_space<vmem>>, vector<1x128xf32>
    %31 = vector.broadcast %30 : vector<1x128xf32> to vector<32x128xf32>
    %32 = arith.mulf %22, %31 : vector<32x128xf32>
    %33 = arith.addf %29, %32 : vector<32x128xf32>
    %34 = arith.truncf %33 : vector<32x128xf32> to vector<32x128xbf16>
    %c0_25 = arith.constant 0 : index
    %c0_26 = arith.constant 0 : index
    %35 = vector.load %arg11[%c0_25, %c0_26] : memref<32x128xbf16, #tpu.memory_space<vmem>>, vector<32x128xbf16>
    tpu.vector_store %arg11[%c0_25, %c0_26], %34 {strides = array<i32>} : memref<32x128xbf16, #tpu.memory_space<vmem>>, vector<32x128xbf16>,
    return
  }
  func.func @transform_0(%arg0: i32) -> (i32, i32) {
    %c0_i32 = arith.constant 0 : i32
    %c0_i32_0 = arith.constant 0 : i32
    return %arg0, %c0_i32 : i32, i32
  }
  func.func @transform_1(%arg0: i32) -> (i32, i32) {
    %c0_i32 = arith.constant 0 : i32
    %c0_i32_0 = arith.constant 0 : i32
    %c0_i32_1 = arith.constant 0 : i32
    return %c0_i32, %c0_i32_0 : i32, i32
  }
  func.func @transform_2(%arg0: i32) -> (i32, i32) {
    %c0_i32 = arith.constant 0 : i32
    %c0_i32_0 = arith.constant 0 : i32
    %c0_i32_1 = arith.constant 0 : i32
    return %c0_i32, %c0_i32_0 : i32, i32
  }
  func.func @transform_3(%arg0: i32) -> (i32, i32) {
    %c0_i32 = arith.constant 0 : i32
    %c0_i32_0 = arith.constant 0 : i32
    %c0_i32_1 = arith.constant 0 : i32
    return %c0_i32, %c0_i32_0 : i32, i32
  }
  func.func @transform_4(%arg0: i32) -> (i32, i32) {
    %c0_i32 = arith.constant 0 : i32
    %c0_i32_0 = arith.constant 0 : i32
    %c0_i32_1 = arith.constant 0 : i32
    return %c0_i32, %c0_i32_0 : i32, i32
  }
  func.func @transform_5(%arg0: i32) -> (i32, i32) {
    %c0_i32 = arith.constant 0 : i32
    %c0_i32_0 = arith.constant 0 : i32
    %c0_i32_1 = arith.constant 0 : i32
    return %c0_i32, %c0_i32_0 : i32, i32
  }
  func.func @transform_6(%arg0: i32) -> (i32, i32) {
    %c0_i32 = arith.constant 0 : i32
    %c0_i32_0 = arith.constant 0 : i32
    %c0_i32_1 = arith.constant 0 : i32
    return %c0_i32, %c0_i32_0 : i32, i32
  }
  func.func @transform_7(%arg0: i32) -> (i32, i32) {
    %c0_i32 = arith.constant 0 : i32
    %c0_i32_0 = arith.constant 0 : i32
    %c0_i32_1 = arith.constant 0 : i32
    return %c0_i32, %c0_i32_0 : i32, i32
  }
  func.func @transform_8(%arg0: i32) -> (i32, i32) {
    %c0_i32 = arith.constant 0 : i32
    %c0_i32_0 = arith.constant 0 : i32
    %c0_i32_1 = arith.constant 0 : i32
    return %c0_i32, %c0_i32_0 : i32, i32
  }
  func.func @transform_9(%arg0: i32) -> (i32, i32) {
    %c0_i32 = arith.constant 0 : i32
    %c0_i32_0 = arith.constant 0 : i32
    %c0_i32_1 = arith.constant 0 : i32
    return %c0_i32, %c0_i32_0 : i32, i32
  }
  func.func @transform_10(%arg0: i32) -> (i32, i32) {
    %c0_i32 = arith.constant 0 : i32
    %c0_i32_0 = arith.constant 0 : i32
    return %arg0, %c0_i32 : i32, i32
  }
}

</mosaic_0001>

<bundles_post_ra>
// kernel: _dann_forward_packed.1
= control target key start
LH: loop header
LB: loop body
LE: loop exit
PB: predicated region body
PF: predicated region fallthrough
CT: control target
= control target key end

     0   :  { %s1962_s0 = inlined_call_operand.hbm [shape: f32[64,310], index: 0, kind: input, shape index: {}]   ;;  %s1963_s1 = inlined_call_operand.hbm [shape: bf16[310,128], index: 1, kind: input, shape index: {}]   ;;  %s1964_s2 = inlined_call_operand.vmem [shape: f32[1,128], index: 2, kind: input, shape index: {}]   ;;  %s1965_s3 = inlined_call_operand.vmem [shape: bf16[128,64], index: 3, kind: input, shape index: {}]   ;;  %s1966_s4 = inlined_call_operand.vmem [shape: f32[1,64], index: 4, kind: input, shape index: {}]   ;;  %s1967_s5 = inlined_call_operand.vmem [shape: bf16[64,128], index: 5, kind: input, shape index: {}]   ;;  %s1968_s6 = inlined_call_operand.vmem [shape: f32[1,128], index: 6, kind: input, shape index: {}]   ;;  %s1969_s7 = inlined_call_operand.hbm [shape: f32[128,128], index: 7, kind: input, shape index: {}]   ;;  %s1970_s8 = inlined_call_operand.vmem [shape: f32[1,128], index: 8, kind: input, shape index: {}]   ;;  %s1971_s9 = inlined_call_operand.vmem [shape: f32[1,128], index: 9, kind: input, shape index: {}]   ;;  %s1972_s10 = inlined_call_operand.vmem [shape: bf16[64,128], index: 10, kind: output, shape index: {}]  }
   0x1   :  { %1978 = sst [smem:[#allocation9_spill]] %s1963_s1 }
   0x2   :  { %15 = vsyncpa [#allocation3], 0 }
   0x3   :  { %17 = vsyncpa [#allocation3 + $0x1], 0 }
   0x4   :  { %18 = vsyncpa [#allocation5], 0  ;;  %s1715_s13 = smov 0   ;;  %s1717_s14 = smov 0  }
   0x5   :  { %s1719_s15 = smov 0   ;;  %s1721_s16 = smov 0  }
   0x6 LB: > { %s1977_s17 = sadd.s32 4294967295, %s1649_s16   ;;  %p44_p0 = scmp.ne.s32.totalorder %s1641_s14, %s1637_s13  ;;  %s1649_s16 = sphi %s1721_s16, %s1992_s16   ;;  %s1645_s15 = sphi %s1719_s15, %s1991_s15   ;;  %s1641_s14 = sphi %s1717_s14, %s1990_s14   ;;  %s1637_s13 = sphi %s1715_s13, %s1989_s13  }
   0x7   : > { %p1737_p1 = scmp.eq.s32.totalorder %s1977_s17, 0  ;;  %p1165_p2 = scmp.ge.s32.totalorder %s1649_s16, 1 }
   0x8   : > { %p270_p3 = scmp.lt.s32.totalorder %s1649_s16, 3  ;;  %s1651_s21 = smov [#allocation4]  }
   0x9   : > { %s1979_s18 = scalar_select %p1737_p1, 1, 0 }
   0xa   : > { %p1745_p4 = por %p1737_p1, %p44_p0  ;;  %p1749_p5 = pnand %p1165_p2, %p270_p3 }
   0xb   : > { %s282_s22 = sshll.u32 %s1651_s21, 4  ;;  %s1652_s24 = smov [#allocation6]   ;;  %s283_s22 = int_to_ptr.vmem [resolvable:$true] %s282_s22 }
   0xc   : > { %s1980_s19 = scalar_select %p1745_p4, 1, 0 }
   0xd   : > { %s1981_s20 = scalar_select %p1749_p5, 1, 0 }
   0xe   : > { %p1437_p6 = pneg %p1749_p5  ;;  %s310_s25 = sshll.u32 %s1652_s24, 4  ;;  %s1761_s25 = int_to_ptr.vmem [resolvable:$true] %s310_s25 }
   0xf   : > { %s1983_s1 = sld [smem:[#allocation9_spill]] }
  0x10   : > { %p1757_p7 = pnand %p1437_p6, %p1737_p1 }
  0x12   : > { %p1527_p9 = pneg %p1757_p7 }
  0x15   : > { %s1525_s28 = scalar_lea.hbm %s1983_s1, 2496 }
  0x16   : > { %p1526_p8 = scmp.ne.s32.totalorder %s1983_s1, %s1525_s28  ;;  %p1532_p12 = scmp.lt.u32.totalorder %s1525_s28, %s1983_s1 }
  0x18   : > { %p1528_p10 = pnand %p1527_p9, %p1526_p8 }
  0x1a   : > { %p1529_p11 = pneg %p1528_p10 }
  0x1c   : > { %p1534_p13 = pnand %p1532_p12, %p1529_p11 }
  0x1e   : > { %1537 = shalt.err (!%p1534_p13)
}
  0x1f   : > { %s1538_s13 = scalar_lea.vmem %s283_s22, 2496  ;;  %p1546_p6 = scmp.lt.s32.totalorder %s283_s22, %s283_s22 }
  0x20   : > { %p1539_p0 = scmp.ne.s32.totalorder %s283_s22, %s1538_s13  ;;  %p1547_p1 = scmp.lt.s32.totalorder %s1538_s13, %s1538_s13 }
  0x22   : > { %p1541_p2 = pnand %p1539_p0, %p1527_p9  ;;  %p1548_p4 = por %p1547_p1, %p1546_p6 }
  0x24   : > { %p1542_p3 = pneg %p1541_p2 }
  0x26   : > { %p1549_p5 = pnand %p1548_p4, %p1542_p3 }
  0x28   : > { %1552 = shalt.err (!%p1549_p5)
}
  0x29   : > { %s1653_s21 = smov 64   ;;  %s1654_s24 = smov 4  }
  0x2a   : > { %1440 = dma.hbm_to_vmem [thread:$0]  (!%p1757_p7), %s1983_s1, 2496, %s283_s22, [#allocation5], %s1653_s21, %s1653_s21, %s1654_s24  }
  0x2b   : > { %s1553_s30 = scalar_lea.hbm %s1969_s7, 2048 }
  0x2c   : > { %p1554_p8 = scmp.ne.s32.totalorder %s1969_s7, %s1553_s30  ;;  %p1560_p5 = scmp.lt.u32.totalorder %s1553_s30, %s1969_s7 }
  0x2e   : > { %p1556_p1 = pnand %p1554_p8, %p1527_p9 }
  0x30   : > { %p1557_p4 = pneg %p1556_p1 }
  0x32   : > { %p1562_p10 = pnand %p1560_p5, %p1557_p4 }
  0x34   : > { %1565 = shalt.err (!%p1562_p10)
}
  0x35   : > { %s1566_s22 = scalar_lea.vmem %s1761_s25, 2048  ;;  %p1574_p0 = scmp.lt.s32.totalorder %s1761_s25, %s1761_s25 }
  0x36   : > { %p1567_p11 = scmp.ne.s32.totalorder %s1761_s25, %s1566_s22  ;;  %p1575_p2 = scmp.lt.s32.totalorder %s1566_s22, %s1566_s22 }
  0x38   : > { %p1569_p12 = pnand %p1567_p11, %p1527_p9  ;;  %p1576_p3 = por %p1575_p2, %p1574_p0 }
  0x3a   : > { %p1570_p13 = pneg %p1569_p12 }
  0x3c   : > { %p1577_p6 = pnand %p1576_p3, %p1570_p13 }
  0x3e   : > { %1580 = shalt.err (!%p1577_p6)
}
  0x3f   : > { %s1655_s17 = smov 128   ;;  %s1656_s21 = smov 8  }
  0x40   : > { %1443 = dma.hbm_to_vmem [thread:$0]  (!%p1757_p7), %s1969_s7, 2048, %s1761_s25, [#allocation5], %s1655_s17, %s1655_s17, %s1656_s21  }
  0x41   : > { %s1811_s27 = sadd.s32 1, %s1649_s16   ;;  %s31_s29 = sadd.s32 1, %s1645_s15 }
  0x42   : > { %s28_s28 = ssub.s32 %s1649_s16, %s1811_s27  ;;  %p38_p8 = scmp.ne.s32.totalorder %s1645_s15, %s1641_s14 }
  0x43   : > { %p29_p9 = scmp.eq.s32.totalorder %s28_s28, 0  ;;  %p39_p1 = scmp.eq.s32.totalorder %s1649_s16, 0 }
  0x44   : > { %p1450_p5 = scmp.lt.s32.totalorder %s1649_s16, 2  ;;  %s330_s11 = sand.u32 1, %s1645_s15  }
  0x45   : > { %s1820_s30 = scalar_select %p29_p9, %s1645_s15, %s31_s29  }
  0x46   : > { %p40_p4 = por %p39_p1, %p38_p8  ;;  %s1425_s12 = smul.u32 1536, %s1649_s16 }
  0x47   : > { %s1424_s13 = smul.u32 96, %s330_s11  ;;  %s1836_s26 = scalar_lea.sflag [#allocation3], %s330_s11 }
  0x48   : > { %s1828_s24 = scalar_lea.hbm %s1962_s0, %s1425_s12  ;;  %p1830_p7 = pnand %p1450_p5, %p40_p4 }
  0x49   : > { %s334_s17 = scalar_lea.vmem [#allocation2], %s1424_s13  ;;  %s1581_s28 = scalar_lea.hbm %s1828_s24, 1536 }
  0x4a   : > { %s342_s21 = sshll.u32 %s334_s17, 4  ;;  %p1582_p10 = scmp.ne.s32.totalorder %s1828_s24, %s1581_s28  ;;  %s1834_s21 = int_to_ptr.vmem [resolvable:$true] %s342_s21 }
  0x4b   : > { %p1583_p11 = pneg %p1830_p7  ;;  %s1586_s23 = scalar_lea.hbm %s1962_s0, 3072 }
  0x4c   : > { %p1587_p0 = scmp.lt.u32.totalorder %s1828_s24, %s1962_s0  ;;  %p1588_p2 = scmp.lt.u32.totalorder %s1586_s23, %s1581_s28 }
  0x4d   : > { %p1584_p12 = pnand %p1583_p11, %p1582_p10  ;;  %p1590_p6 = scmp.lt.u32.totalorder %s1581_s28, %s1828_s24 }
  0x4e   : > { %p1589_p3 = por %p1588_p2, %p1587_p0 }
  0x4f   : > { %p1585_p13 = pneg %p1584_p12 }
  0x50   : > { %p1591_p9 = por %p1590_p6, %p1589_p3 }
  0x52   : > { %p1592_p8 = pnand %p1591_p9, %p1585_p13 }
  0x54   : > { %1595 = shalt.err (!%p1592_p8)
}
  0x55   : > { %s1596_s11 = scalar_lea.vmem %s1834_s21, 1536  ;;  %s1657_s13 = smov [#allocation2]  }
  0x56   : > { %p1597_p1 = scmp.ne.s32.totalorder %s1834_s21, %s1596_s11  ;;  %s1601_s17 = sshll.u32 %s1657_s13, 4  ;;  %s1602_s17 = int_to_ptr.vmem [resolvable:$false] %s1601_s17 }
  0x57   : > { %s1603_s1 = scalar_lea.vmem %s1602_s17, 3072  ;;  %p1604_p10 = scmp.lt.s32.totalorder %s1834_s21, %s1602_s17 }
  0x58   : > { %p1599_p4 = pnand %p1597_p1, %p1583_p11  ;;  %p1605_p12 = scmp.lt.s32.totalorder %s1603_s1, %s1596_s11 }
  0x5a   : > { %p1600_p5 = pneg %p1599_p4  ;;  %p1606_p0 = por %p1605_p12, %p1604_p10 }
  0x5c   : > { %p1607_p2 = pnand %p1606_p0, %p1600_p5 }
  0x5e   : > { %1610 = shalt.err (!%p1607_p2)
}
  0x5f   : > { %s1658_s28 = smov 384   ;;  %s1659_s29 = smov 24  }
  0x60   : > { %1447 = dma.hbm_to_vmem [thread:$0]  (!%p1830_p7), %s1828_s24, 1536, %s1834_s21, %s1836_s26, %s1658_s28, %s1658_s28, %s1659_s29  }
  0x61   : > { %p1985_p11 = scmp.ne.s32.totalorder %s1981_s20, 0 }
  0x62   : > { %s356_s12 = sand.u32 (!%p1985_p11), 1, %s1641_s14   ;;  %p1986_p13 = scmp.ne.s32.totalorder (!%p1985_p11), %s1980_s19, 0 }
  0x63   : > { %354 = sbr.rel (%p1985_p11) target bundleno = 1041 (0x411), region = 60  ;;  %s357_s22 = scalar_lea.sflag (!%p1985_p11), [#allocation3], %s356_s12 }
  0x64   : > { %s1426_s23 = smul.u32 (!%p1985_p11), 96, %s356_s12 }
  0x66   : > { %s1867_s11 = scalar_lea.vmem (!%p1985_p11), [#allocation2], %s1426_s23 }
  0x6a   : > { %1628 = dma.done.wait (%p1986_p13), %s357_s22, 1536  }
  0x6b   : > { %1630 = vsyncadd (%p1986_p13), %s357_s22, 4294965760  ;;  %p1987_p3 = scmp.ne.s32.totalorder %s1979_s18, 0 }
  0x6d   : > { %1632 = dma.done.wait (%p1987_p3), [#allocation5], 4544  }
  0x6e   : > { %1634 = vsyncadd (%p1987_p3), [#allocation5], 4294962752  ;;  %v1493_v0 = vld [vmem:[#allocation4 + $0x40] sm:$0xff]   ;;  %v1495_v2 = vld [vmem:[#allocation4 + $0x48] sm:$0xff]   ;;  %vm601_vm0 = vcmask 1042432   ;;  %vm594_vm1 = vcmask 441344  }
  0x6f   : > { %v1494_v1 = vld [vmem:[#allocation4] sm:$0xff]   ;;  %1239 = vmatprep.subr.bf16.mxu0 %v1493_v0  ;;  %v1496_v3 = vld [vmem:[#allocation4 + $0x8] sm:$0xff]   ;;  %v1497_v4 = vld [vmem:[#allocation4 + $0x50] sm:$0xff]   ;;  %vm874_vm2 = vcmask 523264   ;;  %s1988_s22 = sadd.s32 4294967295, %s1649_s16  }
  0x70   : > { %1240 = vmatpush3.bf16.msra.mxu0 %v1494_v1  ;;  %v1498_v5 = vld [vmem:[#allocation4 + $0x10] sm:$0xff]   ;;  %v1499_v6 = vld [vmem:[#allocation4 + $0x58] sm:$0xff]   ;;  %v1504_v8 = vld [vmem:[#allocation4 + $0x80] sm:$0xff]  }
  0x71   : > { %1241 = vmatprep.subr.bf16.mxu0 %v1495_v2  ;;  %v1500_v7 = vld [vmem:[#allocation4 + $0x18] sm:$0xff]   ;;  %v1501_v9 = vld [vmem:[#allocation4 + $0x60] sm:$0xff]   ;;  %1309 = vmatprep.subr.bf16.mxu1 %v1504_v8  ;;  %v1507_v10 = vld [vmem:[#allocation4 + $0x88] sm:$0xff]  }
  0x72   : > { %1310 = vmatpush3.bf16.msra.mxu1 %v1504_v8  ;;  %v1502_v11 = vld [vmem:[#allocation4 + $0x20] sm:$0xff]   ;;  %v1503_v12 = vld [vmem:[#allocation4 + $0x68] sm:$0xff]   ;;  %v1510_v13 = vld [vmem:[#allocation4 + $0x90] sm:$0xff]  }
  0x73   : > { %1311 = vmatprep.subr.bf16.mxu1 %v1507_v10  ;;  %v1505_v14 = vld [vmem:[#allocation4 + $0x28] sm:$0xff]   ;;  %v417_v16 = vld [vmem:[%s1867_s11 + $0x20] sm:$0xff]  ;;  %v1506_v17 = vld [vmem:[#allocation4 + $0x70] sm:$0xff]  }
  0x74   : > { %1242 = vmatpush3.bf16.msra.mxu0 %v1496_v3  ;;  %v414_v15 = vld [vmem:[%s1867_s11 + $0x8] sm:$0xff]  ;;  %v1512_v19 = vld [vmem:[#allocation4 + $0x98] ss:$0 sps:$4 sm:$0x77]   ;;  %v415_v20 = vld [vmem:[%s1867_s11 + $0x10] sm:$0xff] }
  0x75   : > { %1243 = vmatprep.subr.bf16.mxu0 %v1497_v4  ;;  %v426_v18 = vpack.c.bf16 %v417_v16, %v414_v15  ;;  %v418_v21 = vld [vmem:[%s1867_s11 + $0x28] sm:$0xff]  ;;  %v421_v23 = vld [vmem:[%s1867_s11 + $0x40] sm:$0xff]  ;;  %v424_v24 = vld [vmem:[%s1867_s11 + $0x58] sm:$0xff]  ;;  %v603_v27 = vsel %vm601_vm0, %v1512_v19, 0 }
  0x76   : > { %1312 = vmatpush3.bf16.msra.mxu1 %v1507_v10  ;;  %v427_v22 = vpack.c.bf16 %v418_v21, %v415_v20  ;;  %v1508_v25 = vld [vmem:[#allocation4 + $0x30] sm:$0xff]   ;;  %v1509_v26 = vld [vmem:[#allocation4 + $0x78] sm:$0xff]   ;;  %v1513_v28 = vld [vmem:[%s1965_s3] sm:$0xff]   ;;  %v430_v32 = vpack.c.bf16 %v424_v24, %v421_v23 }
  0x77   : > { %1313 = vmatprep.subr.bf16.mxu1 %v1510_v13  ;;  %637 = vmatprep.mubr.bf16.mxu0 %v426_v18  ;;  %v1511_v29 = vld [vmem:[#allocation4 + $0x38] sm:$0xff]   ;;  %v413_v30 = vld [vmem:[%s1867_s11] sm:$0xff]  ;;  %v423_v34 = vld [vmem:[%s1867_s11 + $0x50] sm:$0xff] }
  0x78   : > { %1244 = vmatpush3.bf16.msra.mxu0 %v1498_v5  ;;  %1317 = vmatprep.mubr.msk.bf16.mxu1 %vm594_vm1, %v427_v22  ;;  %v416_v31 = vld [vmem:[%s1867_s11 + $0x18] sm:$0xff]  ;;  %v1514_v35 = vld [vmem:[%s1965_s3 + $0x8] sm:$0xff]   ;;  %v1515_v36 = vld [vmem:[%s1965_s3 + $0x10] sm:$0xff]  }
  0x79   : > { %1245 = vmatprep.subr.bf16.mxu0 %v1499_v6  ;;  %v420_v33 = vld [vmem:[%s1867_s11 + $0x38] sm:$0xff]  ;;  %v425_v37 = vpack.c.bf16 %v416_v31, %v413_v30  ;;  %v419_v39 = vld [vmem:[%s1867_s11 + $0x30] sm:$0xff]  ;;  %v422_v40 = vld [vmem:[%s1867_s11 + $0x48] sm:$0xff]  ;;  %s1175_s11 = sshll.u32 %s1988_s22, 2 }
  0x7a   : > { %1314 = vmatpush3.bf16.msra.mxu1 %v1510_v13  ;;  %v429_v38 = vpack.c.bf16 %v423_v34, %v420_v33  ;;  %v428_v41 = vpack.c.bf16 %v422_v40, %v419_v39  ;;  %v1516_v42 = vld [vmem:[%s1965_s3 + $0x18] sm:$0xff]   ;;  %v1517_v43 = vld [vmem:[%s1965_s3 + $0x20] sm:$0xff]   ;;  %v1518_v44 = vld [vmem:[%s1965_s3 + $0x28] sm:$0xff]   ;;  %p407_p7 = scmp.lt.s32.totalorder %s1175_s11, 7 }
  0x7b   : > { %1423 = vmatprep.subr.msk.bf16.mxu1 %vm601_vm0, %v1512_v19  ;;  %v1519_v45 = vld [vmem:[%s1965_s3 + $0x30] sm:$0xff]   ;;  %v1520_v46 = vld [vmem:[%s1965_s3 + $0x38] sm:$0xff]   ;;  %v1521_v47 = vld [vmem:[%s1967_s5] sm:$0xff]  }
  0x7c   : > { %1246 = vmatpush3.bf16.msra.mxu0 %v1500_v7  ;;  %v1177_v54 = vld [vmem:[%s1964_s2] ss:$0 sm:$0xff]  ;;  %v1522_v15 = vld [vmem:[%s1967_s5 + $0x8] sm:$0xff]   ;;  %v1523_v16 = vld [vmem:[%s1967_s5 + $0x10] sm:$0xff]   ;;  %s1994_s11 = smov (!%p407_p7, %s1175_s11), 7 }
  0x7d   : > { %1247 = vmatprep.subr.bf16.mxu0 %v1501_v9  ;;  %v934_v18 = vld [vmem:[#allocation6] sm:$0xff]  ;;  %v935_v19 = vld [vmem:[#allocation6 + $0x8] sm:$0xff]  ;;  %v936_v20 = vld [vmem:[#allocation6 + $0x10] sm:$0xff]  ;;  %s1176_s25 = sshll.u32 %s1994_s11, 2 }
  0x7e   : > { %1316 = vmatpush3.bf16.msra.mxu1 %v603_v27  ;;  %v1391_v21 = vpack.c.bf16 %v935_v19, %v934_v18  ;;  %v937_v22 = vld [vmem:[#allocation6 + $0x18] sm:$0xff]  ;;  %v938_v24 = vld [vmem:[#allocation6 + $0x20] sm:$0xff]  ;;  %v940_v27 = vld [vmem:[#allocation6 + $0x30] sm:$0xff]  ;;  %s410_s26 = scalar_lea.vmem %s1972_s10, %s1176_s25 }
  0x7f   : > { %1321 = vmatprep.subr.bf16.mxu1 %v1513_v28  ;;  %v1395_v23 = vpack.c.bf16 %v937_v22, %v936_v20  ;;  %v942_v30 = vld [vmem:[#allocation6 + $0x40] sm:$0xff]  ;;  %v943_v31 = vld [vmem:[#allocation6 + $0x48] sm:$0xff]  ;;  %v944_v33 = vld [vmem:[#allocation6 + $0x50] sm:$0xff] }
  0x80   : > { %1248 = vmatpush3.bf16.msra.mxu0 %v1502_v11  ;;  %v945_v34 = vld [vmem:[#allocation6 + $0x58] sm:$0xff] }
  0x81   : > { %1249 = vmatprep.subr.bf16.mxu0 %v1503_v12  ;;  %1318 = vmatmul.mubr.msk.bf16.vlgmr.msra.gmra.mrb[0].mxu1 %vm594_vm1, %v430_v32  ;;  %v1407_v32 = vpack.c.bf16 %v943_v31, %v942_v30 }
  0x82   : > { %1322 = vmatpush3.bf16.msra.mxu1 %v1513_v28  ;;  %v941_v28 = vld [vmem:[#allocation6 + $0x38] sm:$0xff] }
  0x83   : > { %1323 = vmatprep.subr.bf16.mxu1 %v1514_v35 }
  0x84   : > { %1250 = vmatpush3.bf16.msra.mxu0 %v1505_v14 }
  0x85   : > { %1251 = vmatprep.subr.bf16.mxu0 %v1506_v17  ;;  %v1524_v17 = vld [vmem:[%s1967_s5 + $0x18] sm:$0xff]  }
  0x86   : > { %1324 = vmatpush3.bf16.msra.mxu1 %v1514_v35  ;;  %v1411_v35 = vpack.c.bf16 %v945_v34, %v944_v33 }
  0x87   : > { %1325 = vmatprep.subr.bf16.mxu1 %v1515_v36 }
  0x88   : > { %1252 = vmatpush3.bf16.msra.mxu0 %v1508_v25  ;;  %v939_v25 = vld [vmem:[#allocation6 + $0x28] sm:$0xff] }
  0x89   : > { %1253 = vmatprep.subr.bf16.mxu0 %v1509_v26  ;;  %v1399_v26 = vpack.c.bf16 %v939_v25, %v938_v24 }
  0x8a   : > { %1326 = vmatpush3.bf16.msra.mxu1 %v1515_v36  ;;  %v1200_v36 = vld [vmem:[%s1966_s4] ss:$0 sm:$0xff] }
  0x8b   : > { %1327 = vmatprep.subr.bf16.mxu1 %v1516_v42 }
  0x8c   : > { %1254 = vmatpush3.bf16.msra.mxu0 %v1511_v29  ;;  %v1403_v29 = vpack.c.bf16 %v941_v28, %v940_v27 }
  0x8d   : > { %1392 = vmatprep.subr.bf16.mxu0 %v1391_v21 }
  0x8e   : > { %1328 = vmatpush3.bf16.msra.mxu1 %v1516_v42 }
  0x8f   : > { %638 = vmatmul.mubr.bf16.vlgmr.msra.gmra.mrb[0].mxu0 %v425_v37  ;;  %1329 = vmatprep.subr.bf16.mxu1 %v1517_v43 }
  0x90   : > { %645 = vmatprep.mubr.bf16.mxu0 %v429_v38  ;;  %1394 = vmatpush3.bf16.msra.mxu0 %v1391_v21 }
  0x91   : > { %1396 = vmatprep.subr.bf16.mxu0 %v1395_v23 }
  0x92   : > { %1330 = vmatpush3.bf16.msra.mxu1 %v1517_v43 }
  0x93   : > { %1331 = vmatprep.subr.bf16.mxu1 %v1518_v44 }
  0x94   : > { %1398 = vmatpush3.bf16.msra.mxu0 %v1395_v23 }
  0x95   : > { %1400 = vmatprep.subr.bf16.mxu0 %v1399_v26 }
  0x96   : > { %1332 = vmatpush3.bf16.msra.mxu1 %v1518_v44 }
  0x97   : > { %646 = vmatmul.mubr.bf16.gmra.mrb[4].mxu0 %v428_v41  ;;  %1333 = vmatprep.subr.bf16.mxu1 %v1519_v45 }
  0x98   : > { %1402 = vmatpush3.bf16.msra.mxu0 %v1399_v26 }
  0x99   : > { %1404 = vmatprep.subr.bf16.mxu0 %v1403_v29 }
  0x9a   : > { %1334 = vmatpush3.bf16.msra.mxu1 %v1519_v45 }
  0x9b   : > { %1335 = vmatprep.subr.bf16.mxu1 %v1520_v46 }
  0x9c   : > { %1406 = vmatpush3.bf16.msra.mxu0 %v1403_v29 }
  0x9d   : > { %1408 = vmatprep.subr.bf16.mxu0 %v1407_v32 }
  0x9e   : > { %1336 = vmatpush3.bf16.msra.mxu1 %v1520_v46 }
  0x9f   : > { %1341 = vmatprep.subr.bf16.mxu1 %v1521_v47 }
  0xa0   : > { %1410 = vmatpush3.bf16.msra.mxu0 %v1407_v32 }
  0xa1   : > { %1412 = vmatprep.subr.bf16.mxu0 %v1411_v35 }
  0xa4   : > { %1414 = vmatpush3.bf16.msra.mxu0 %v1411_v35 }
 0x154   : > { %v1319_v48 = vpop.f32.mrb[0].mxu1 }
 0x155   : > { %v688_v49 = vpop.f32.mrb[1].mxu1 }
 0x156   : > { %v1320_v50 = vpop.f32.mrb[2].mxu1 }
 0x157   : > { %v691_v51 = vpop.f32.mrb[3].mxu1 }
 0x162   : > { %v1255_v52 = vpop.f32.mrb[0].mxu0 }
 0x163   : > { %v1256_v53 = vpop.f32.mrb[1].mxu0 }
 0x164   : > { %v1257_v55 = vadd.f32 %v1256_v53, %v1255_v52  ;;  %v1258_v56 = vpop.f32.mrb[2].mxu0  ;;  %v947_v52 = vld [vmem:[#allocation6 + $0x68] sm:$0xff] }
 0x165   : > { %v1259_v57 = vpop.f32.mrb[3].mxu0 }
 0x166   : > { %v1260_v58 = vadd.f32 %v1259_v57, %v1258_v56  ;;  %v640_v59 = vadd.f32 %v1257_v55, %v1177_v54  ;;  %v949_v55 = vld [vmem:[#allocation6 + $0x78] sm:$0xff]  ;;  %v1209_v57 = vld [vmem:[%s1968_s6] ss:$0 sm:$0xff] }
 0x168   : > { %v689_v60 = vadd.f32 %v688_v49, %v640_v59  ;;  %v643_v61 = vadd.f32 %v1260_v58, %v1177_v54 }
 0x16a   : > { %v692_v62 = vadd.f32 %v691_v51, %v643_v61  ;;  %v1261_v63 = vpop.f32.mrb[4].mxu0  ;;  %v703_v1 = vmax.f32 %v689_v60, 0.0  ;;  %v946_v51 = vld [vmem:[#allocation6 + $0x60] sm:$0xff] }
 0x16b   : > { %v1262_v0 = vpop.f32.mrb[5].mxu0  ;;  %v1415_v53 = vpack.c.bf16 %v947_v52, %v946_v51 }
 0x16c   : > { %v704_v2 = vmax.f32 %v692_v62, 0.0  ;;  %v1263_v3 = vadd.f32 %v1262_v0, %v1261_v63  ;;  %v1264_v4 = vpop.f32.mrb[6].mxu0 }
 0x16d   : > { %v1265_v5 = vpop.f32.mrb[7].mxu0  ;;  %1416 = vmatprep.subr.bf16.mxu0 %v1415_v53 }
 0x16e   : > { %v707_v6 = vpack.c.bf16 %v704_v2, %v703_v1  ;;  %v648_v7 = vadd.f32 %v1263_v3, %v1177_v54  ;;  %v1266_v8 = vadd.f32 %v1265_v5, %v1264_v4  ;;  %1418 = vmatpush3.bf16.msra.mxu0 %v1415_v53 }
 0x170   : > { %v697_v9 = vadd.f32 %v1319_v48, %v648_v7  ;;  %v651_v10 = vadd.f32 %v1266_v8, %v1177_v54  ;;  %1337 = vmatprep.mubr.bf16.mxu1 %v707_v6  ;;  %v948_v54 = vld [vmem:[#allocation6 + $0x70] sm:$0xff]  ;;  %v1216_v6 = vld [vmem:[%s1970_s8] ss:$0 sm:$0xff] }
 0x171   : > { %v1419_v56 = vpack.c.bf16 %v949_v55, %v948_v54  ;;  %v1217_v7 = vld [vmem:[%s1971_s9] ss:$0 sm:$0xff] }
 0x172   : > { %v700_v11 = vadd.f32 %v1320_v50, %v651_v10  ;;  %v705_v12 = vmax.f32 %v697_v9, 0.0 }
 0x173   : > { %1420 = vmatprep.subr.bf16.mxu0 %v1419_v56 }
 0x174   : > { %v706_v13 = vmax.f32 %v700_v11, 0.0  ;;  %1422 = vmatpush3.bf16.msra.mxu0 %v1419_v56 }
 0x176   : > { %v708_v14 = vpack.c.bf16 %v706_v13, %v705_v12 }
 0x178   : > { %1338 = vmatmul.mubr.bf16.vlgmr.msra.gmra.mrb[4].mxu1 %v708_v14 }
 0x179   : > { %1342 = vmatpush3.bf16.msra.mxu1 %v1521_v47 }
 0x17a   : > { %1343 = vmatprep.subr.bf16.mxu1 %v1522_v15 }
 0x17d   : > { %1344 = vmatpush3.bf16.msra.mxu1 %v1522_v15 }
 0x17e   : > { %1345 = vmatprep.subr.bf16.mxu1 %v1523_v16 }
 0x181   : > { %1346 = vmatpush3.bf16.msra.mxu1 %v1523_v16 }
 0x182   : > { %1347 = vmatprep.subr.bf16.mxu1 %v1524_v17 }
 0x185   : > { %1348 = vmatpush3.bf16.msra.mxu1 %v1524_v17 }
 0x24b   : > { %v1339_v37 = vpop.f32.mrb[4].mxu1 }
 0x24c   : > { %v823_v38 = vadd.f32 %v1339_v37, %v1200_v36  ;;  %v814_v39 = vpop.f32.mrb[5].mxu1 }
 0x24d   : > { %v815_v40 = vadd.f32 %v1200_v36, %v814_v39  ;;  %v1340_v41 = vpop.f32.mrb[6].mxu1 }
 0x24e   : > { %v826_v42 = vadd.f32 %v1340_v41, %v1200_v36  ;;  %v817_v43 = vpop.f32.mrb[7].mxu1  ;;  %v831_v45 = vmax.f32 %v823_v38, 0.0 }
 0x24f   : > { %v818_v44 = vadd.f32 %v1200_v36, %v817_v43  ;;  %v829_v47 = vmax.f32 %v815_v40, 0.0 }
 0x250   : > { %v832_v46 = vmax.f32 %v826_v42, 0.0 }
 0x251   : > { %v830_v48 = vmax.f32 %v818_v44, 0.0 }
 0x252   : > { %v834_v49 = vpack.c.bf16 %v832_v46, %v831_v45 }
 0x253   : > { %v833_v50 = vpack.c.bf16 %v830_v48, %v829_v47 }
 0x255   : > { %1349 = vmatprep.mubr.msk.bf16.mxu1 %vm874_vm2, %v833_v50 }
 0x256   : > { %1350 = vmatmul.mubr.msk.bf16.vlgmr.msra.gmra.mrb[8].mxu1 %vm874_vm2, %v834_v49 }
 0x329   : > { %v1351_v58 = vpop.f32.mrb[8].mxu1 }
 0x32a   : > { %v915_v59 = vpop.f32.mrb[9].mxu1  ;;  %v924_v62 = vadd.f32 %v1351_v58, %v1209_v57 }
 0x32b   : > { %v916_v60 = vadd.f32 %v1209_v57, %v915_v59  ;;  %v1352_v61 = vpop.f32.mrb[10].mxu1 }
 0x32c   : > { %v918_v63 = vpop.f32.mrb[11].mxu1  ;;  %v927_v2 = vadd.f32 %v1352_v61, %v1209_v57  ;;  %v932_v4 = vmax.f32 %v924_v62, 0.0  ;;  %v1051_v20 = vmul.f32 %v1217_v7, %v924_v62 }
 0x32d   : > { %v930_v0 = vmax.f32 %v916_v60, 0.0  ;;  %v919_v1 = vadd.f32 %v1209_v57, %v918_v63  ;;  %v1049_v12 = vmul.f32 %v1217_v7, %v916_v60 }
 0x32e   : > { %v933_v5 = vmax.f32 %v927_v2, 0.0  ;;  %v1052_v17 = vmul.f32 %v1217_v7, %v927_v2 }
 0x32f   : > { %v931_v3 = vmax.f32 %v919_v1, 0.0  ;;  %1385 = vmatprep.mubr.f32.mxu0 %v930_v0  ;;  %v1050_v9 = vmul.f32 %v1217_v7, %v919_v1 }
 0x331   : > { %1386 = vmatmul.mubr.f32.vlgmr.msra.gmra.mrb[8].mxu0 %v931_v3 }
 0x332   : > { %1388 = vmatprep.mubr.f32.mxu0 %v932_v4 }
 0x335   : > { %1389 = vmatmul.mubr.f32.gmra.mrb[10].mxu0 %v933_v5 }
 0x404   : > { %v1387_v8 = vpop.f32.mrb[8].mxu0 }
 0x405   : > { %v1029_v10 = vadd.f32 %v1387_v8, %v1216_v6  ;;  %v1023_v11 = vpop.f32.mrb[9].mxu0 }
 0x406   : > { %v1024_v13 = vadd.f32 %v1216_v6, %v1023_v11 }
 0x407   : > { %v1054_v14 = vadd.f32 %v1050_v9, %v1029_v10 }
 0x408   : > { %v1053_v15 = vadd.f32 %v1049_v12, %v1024_v13  ;;  %v1390_v16 = vpop.f32.mrb[10].mxu0 }
 0x409   : > { %v1039_v18 = vadd.f32 %v1390_v16, %v1216_v6  ;;  %v1033_v19 = vpop.f32.mrb[11].mxu0 }
 0x40a   : > { %v1231_v21 = vpack.c.bf16 %v1054_v14, %v1053_v15  ;;  %v1034_v22 = vadd.f32 %v1216_v6, %v1033_v19 }
 0x40b   : > { %v1056_v23 = vadd.f32 %v1052_v17, %v1039_v18 }
 0x40c   : > { %1232 = vst [vmem:[%s410_s26] sm:$0xff] %v1231_v21   ;;  %v1055_v24 = vadd.f32 %v1051_v20, %v1034_v22 }
 0x40e   : > { %v1236_v25 = vpack.c.bf16 %v1056_v23, %v1055_v24 }
 0x410   : > { %1238 = vst [vmem:[%s410_s26 + $0x8] sm:$0xff] %v1236_v25  }
 0x411 PF: > { %p21_p6 = scmp.ge.s32.totalorder %s1811_s27, 4   ;;  %s1989_s13 = smov %s1641_s14 }
 0x412   : > { %s1990_s14 = smov %s1645_s15  ;;  %s1991_s15 = smov %s1820_s30 }
 0x413   : > { %s1992_s16 = smov %s1811_s27  ;;  %23 = sbr.rel (!%p21_p6) target bundleno = 6 (0x6), region = 108 }
 0x41a   :  { %1099 = vsyncpa [#allocation3], 1 }
 0x41b   :  { %1101 = vsyncpa [#allocation3 + $0x1], 1 }
 0x41c   :  { %1102 = vsyncpa [#allocation5], 1 }

// kernel: _dann_forward_packed.1
= control target key start
LH: loop header
LB: loop body
LE: loop exit
PB: predicated region body
PF: predicated region fallthrough
CT: control target
= control target key end

     0   :  { %s1962_s0 = inlined_call_operand.hbm [shape: f32[64,310], index: 0, kind: input, shape index: {}]   ;;  %s1963_s1 = inlined_call_operand.hbm [shape: bf16[310,128], index: 1, kind: input, shape index: {}]   ;;  %s1964_s2 = inlined_call_operand.vmem [shape: f32[1,128], index: 2, kind: input, shape index: {}]   ;;  %s1965_s3 = inlined_call_operand.vmem [shape: bf16[128,64], index: 3, kind: input, shape index: {}]   ;;  %s1966_s4 = inlined_call_operand.vmem [shape: f32[1,64], index: 4, kind: input, shape index: {}]   ;;  %s1967_s5 = inlined_call_operand.vmem [shape: bf16[64,128], index: 5, kind: input, shape index: {}]   ;;  %s1968_s6 = inlined_call_operand.vmem [shape: f32[1,128], index: 6, kind: input, shape index: {}]   ;;  %s1969_s7 = inlined_call_operand.hbm [shape: f32[128,128], index: 7, kind: input, shape index: {}]   ;;  %s1970_s8 = inlined_call_operand.vmem [shape: f32[1,128], index: 8, kind: input, shape index: {}]   ;;  %s1971_s9 = inlined_call_operand.vmem [shape: f32[1,128], index: 9, kind: input, shape index: {}]   ;;  %s1972_s10 = inlined_call_operand.vmem [shape: bf16[64,128], index: 10, kind: output, shape index: {}]  }
   0x1   :  { %1978 = sst [smem:[#allocation9_spill]] %s1963_s1 }
   0x2   :  { %15 = vsyncpa [#allocation3], 0 }
   0x3   :  { %17 = vsyncpa [#allocation3 + $0x1], 0 }
   0x4   :  { %18 = vsyncpa [#allocation5], 0  ;;  %s1715_s13 = smov 0   ;;  %s1717_s14 = smov 0  }
   0x5   :  { %s1719_s15 = smov 0   ;;  %s1721_s16 = smov 0  }
   0x6 LB: > { %s1977_s17 = sadd.s32 4294967295, %s1649_s16   ;;  %p44_p0 = scmp.ne.s32.totalorder %s1641_s14, %s1637_s13  ;;  %s1649_s16 = sphi %s1721_s16, %s1992_s16   ;;  %s1645_s15 = sphi %s1719_s15, %s1991_s15   ;;  %s1641_s14 = sphi %s1717_s14, %s1990_s14   ;;  %s1637_s13 = sphi %s1715_s13, %s1989_s13  }
   0x7   : > { %p1737_p1 = scmp.eq.s32.totalorder %s1977_s17, 0  ;;  %p1165_p2 = scmp.ge.s32.totalorder %s1649_s16, 1 }
   0x8   : > { %p270_p3 = scmp.lt.s32.totalorder %s1649_s16, 3  ;;  %s1651_s21 = smov [#allocation4]  }
   0x9   : > { %s1979_s18 = scalar_select %p1737_p1, 1, 0 }
   0xa   : > { %p1745_p4 = por %p1737_p1, %p44_p0  ;;  %p1749_p5 = pnand %p1165_p2, %p270_p3 }
   0xb   : > { %s282_s22 = sshll.u32 %s1651_s21, 4  ;;  %s1652_s24 = smov [#allocation6]   ;;  %s283_s22 = int_to_ptr.vmem [resolvable:$true] %s282_s22 }
   0xc   : > { %s1980_s19 = scalar_select %p1745_p4, 1, 0 }
   0xd   : > { %s1981_s20 = scalar_select %p1749_p5, 1, 0 }
   0xe   : > { %p1437_p6 = pneg %p1749_p5  ;;  %s310_s25 = sshll.u32 %s1652_s24, 4  ;;  %s1761_s25 = int_to_ptr.vmem [resolvable:$true] %s310_s25 }
   0xf   : > { %s1983_s1 = sld [smem:[#allocation9_spill]] }
  0x10   : > { %p1757_p7 = pnand %p1437_p6, %p1737_p1 }
  0x12   : > { %p1527_p9 = pneg %p1757_p7 }
  0x15   : > { %s1525_s28 = scalar_lea.hbm %s1983_s1, 2496 }
  0x16   : > { %p1526_p8 = scmp.ne.s32.totalorder %s1983_s1, %s1525_s28  ;;  %p1532_p12 = scmp.lt.u32.totalorder %s1525_s28, %s1983_s1 }
  0x18   : > { %p1528_p10 = pnand %p1527_p9, %p1526_p8 }
  0x1a   : > { %p1529_p11 = pneg %p1528_p10 }
  0x1c   : > { %p1534_p13 = pnand %p1532_p12, %p1529_p11 }
  0x1e   : > { %1537 = shalt.err (!%p1534_p13)
}
  0x1f   : > { %s1538_s13 = scalar_lea.vmem %s283_s22, 2496  ;;  %p1546_p6 = scmp.lt.s32.totalorder %s283_s22, %s283_s22 }
  0x20   : > { %p1539_p0 = scmp.ne.s32.totalorder %s283_s22, %s1538_s13  ;;  %p1547_p1 = scmp.lt.s32.totalorder %s1538_s13, %s1538_s13 }
  0x22   : > { %p1541_p2 = pnand %p1539_p0, %p1527_p9  ;;  %p1548_p4 = por %p1547_p1, %p1546_p6 }
  0x24   : > { %p1542_p3 = pneg %p1541_p2 }
  0x26   : > { %p1549_p5 = pnand %p1548_p4, %p1542_p3 }
  0x28   : > { %1552 = shalt.err (!%p1549_p5)
}
  0x29   : > { %s1653_s21 = smov 64   ;;  %s1654_s24 = smov 4  }
  0x2a   : > { %1440 = dma.hbm_to_vmem [thread:$0]  (!%p1757_p7), %s1983_s1, 2496, %s283_s22, [#allocation5], %s1653_s21, %s1653_s21, %s1654_s24  }
  0x2b   : > { %s1553_s30 = scalar_lea.hbm %s1969_s7, 2048 }
  0x2c   : > { %p1554_p8 = scmp.ne.s32.totalorder %s1969_s7, %s1553_s30  ;;  %p1560_p5 = scmp.lt.u32.totalorder %s1553_s30, %s1969_s7 }
  0x2e   : > { %p1556_p1 = pnand %p1554_p8, %p1527_p9 }
  0x30   : > { %p1557_p4 = pneg %p1556_p1 }
  0x32   : > { %p1562_p10 = pnand %p1560_p5, %p1557_p4 }
  0x34   : > { %1565 = shalt.err (!%p1562_p10)
}
  0x35   : > { %s1566_s22 = scalar_lea.vmem %s1761_s25, 2048  ;;  %p1574_p0 = scmp.lt.s32.totalorder %s1761_s25, %s1761_s25 }
  0x36   : > { %p1567_p11 = scmp.ne.s32.totalorder %s1761_s25, %s1566_s22  ;;  %p1575_p2 = scmp.lt.s32.totalorder %s1566_s22, %s1566_s22 }
  0x38   : > { %p1569_p12 = pnand %p1567_p11, %p1527_p9  ;;  %p1576_p3 = por %p1575_p2, %p1574_p0 }
  0x3a   : > { %p1570_p13 = pneg %p1569_p12 }
  0x3c   : > { %p1577_p6 = pnand %p1576_p3, %p1570_p13 }
  0x3e   : > { %1580 = shalt.err (!%p1577_p6)
}
  0x3f   : > { %s1655_s17 = smov 128   ;;  %s1656_s21 = smov 8  }
  0x40   : > { %1443 = dma.hbm_to_vmem [thread:$0]  (!%p1757_p7), %s1969_s7, 2048, %s1761_s25, [#allocation5], %s1655_s17, %s1655_s17, %s1656_s21  }
  0x41   : > { %s1811_s27 = sadd.s32 1, %s1649_s16   ;;  %s31_s29 = sadd.s32 1, %s1645_s15 }
  0x42   : > { %s28_s28 = ssub.s32 %s1649_s16, %s1811_s27  ;;  %p38_p8 = scmp.ne.s32.totalorder %s1645_s15, %s1641_s14 }
  0x43   : > { %p29_p9 = scmp.eq.s32.totalorder %s28_s28, 0  ;;  %p39_p1 = scmp.eq.s32.totalorder %s1649_s16, 0 }
  0x44   : > { %p1450_p5 = scmp.lt.s32.totalorder %s1649_s16, 2  ;;  %s330_s11 = sand.u32 1, %s1645_s15  }
  0x45   : > { %s1820_s30 = scalar_select %p29_p9, %s1645_s15, %s31_s29  }
  0x46   : > { %p40_p4 = por %p39_p1, %p38_p8  ;;  %s1425_s12 = smul.u32 1536, %s1649_s16 }
  0x47   : > { %s1424_s13 = smul.u32 96, %s330_s11  ;;  %s1836_s26 = scalar_lea.sflag [#allocation3], %s330_s11 }
  0x48   : > { %s1828_s24 = scalar_lea.hbm %s1962_s0, %s1425_s12  ;;  %p1830_p7 = pnand %p1450_p5, %p40_p4 }
  0x49   : > { %s334_s17 = scalar_lea.vmem [#allocation2], %s1424_s13  ;;  %s1581_s28 = scalar_lea.hbm %s1828_s24, 1536 }
  0x4a   : > { %s342_s21 = sshll.u32 %s334_s17, 4  ;;  %p1582_p10 = scmp.ne.s32.totalorder %s1828_s24, %s1581_s28  ;;  %s1834_s21 = int_to_ptr.vmem [resolvable:$true] %s342_s21 }
  0x4b   : > { %p1583_p11 = pneg %p1830_p7  ;;  %s1586_s23 = scalar_lea.hbm %s1962_s0, 3072 }
  0x4c   : > { %p1587_p0 = scmp.lt.u32.totalorder %s1828_s24, %s1962_s0  ;;  %p1588_p2 = scmp.lt.u32.totalorder %s1586_s23, %s1581_s28 }
  0x4d   : > { %p1584_p12 = pnand %p1583_p11, %p1582_p10  ;;  %p1590_p6 = scmp.lt.u32.totalorder %s1581_s28, %s1828_s24 }
  0x4e   : > { %p1589_p3 = por %p1588_p2, %p1587_p0 }
  0x4f   : > { %p1585_p13 = pneg %p1584_p12 }
  0x50   : > { %p1591_p9 = por %p1590_p6, %p1589_p3 }
  0x52   : > { %p1592_p8 = pnand %p1591_p9, %p1585_p13 }
  0x54   : > { %1595 = shalt.err (!%p1592_p8)
}
  0x55   : > { %s1596_s11 = scalar_lea.vmem %s1834_s21, 1536  ;;  %s1657_s13 = smov [#allocation2]  }
  0x56   : > { %p1597_p1 = scmp.ne.s32.totalorder %s1834_s21, %s1596_s11  ;;  %s1601_s17 = sshll.u32 %s1657_s13, 4  ;;  %s1602_s17 = int_to_ptr.vmem [resolvable:$false] %s1601_s17 }
  0x57   : > { %s1603_s1 = scalar_lea.vmem %s1602_s17, 3072  ;;  %p1604_p10 = scmp.lt.s32.totalorder %s1834_s21, %s1602_s17 }
  0x58   : > { %p1599_p4 = pnand %p1597_p1, %p1583_p11  ;;  %p1605_p12 = scmp.lt.s32.totalorder %s1603_s1, %s1596_s11 }
  0x5a   : > { %p1600_p5 = pneg %p1599_p4  ;;  %p1606_p0 = por %p1605_p12, %p1604_p10 }
  0x5c   : > { %p1607_p2 = pnand %p1606_p0, %p1600_p5 }
  0x5e   : > { %1610 = shalt.err (!%p1607_p2)
}
  0x5f   : > { %s1658_s28 = smov 384   ;;  %s1659_s29 = smov 24  }
  0x60   : > { %1447 = dma.hbm_to_vmem [thread:$0]  (!%p1830_p7), %s1828_s24, 1536, %s1834_s21, %s1836_s26, %s1658_s28, %s1658_s28, %s1659_s29  }
  0x61   : > { %p1985_p11 = scmp.ne.s32.totalorder %s1981_s20, 0 }
  0x62   : > { %s356_s12 = sand.u32 (!%p1985_p11), 1, %s1641_s14   ;;  %p1986_p13 = scmp.ne.s32.totalorder (!%p1985_p11), %s1980_s19, 0 }
  0x63   : > { %354 = sbr.rel (%p1985_p11) target bundleno = 1041 (0x411), region = 60  ;;  %s357_s22 = scalar_lea.sflag (!%p1985_p11), [#allocation3], %s356_s12 }
  0x64   : > { %s1426_s23 = smul.u32 (!%p1985_p11), 96, %s356_s12 }
  0x66   : > { %s1867_s11 = scalar_lea.vmem (!%p1985_p11), [#allocation2], %s1426_s23 }
  0x6a   : > { %1628 = dma.done.wait (%p1986_p13), %s357_s22, 1536  }
  0x6b   : > { %1630 = vsyncadd (%p1986_p13), %s357_s22, 4294965760  ;;  %p1987_p3 = scmp.ne.s32.totalorder %s1979_s18, 0 }
  0x6d   : > { %1632 = dma.done.wait (%p1987_p3), [#allocation5], 4544  }
  0x6e   : > { %1634 = vsyncadd (%p1987_p3), [#allocation5], 4294962752  ;;  %v1493_v0 = vld [vmem:[#allocation4 + $0x40] sm:$0xff]   ;;  %v1495_v2 = vld [vmem:[#allocation4 + $0x48] sm:$0xff]   ;;  %vm601_vm0 = vcmask 1042432   ;;  %vm594_vm1 = vcmask 441344  }
  0x6f   : > { %v1494_v1 = vld [vmem:[#allocation4] sm:$0xff]   ;;  %1239 = vmatprep.subr.bf16.mxu0 %v1493_v0  ;;  %v1496_v3 = vld [vmem:[#allocation4 + $0x8] sm:$0xff]   ;;  %v1497_v4 = vld [vmem:[#allocation4 + $0x50] sm:$0xff]   ;;  %vm874_vm2 = vcmask 523264   ;;  %s1988_s22 = sadd.s32 4294967295, %s1649_s16  }
  0x70   : > { %1240 = vmatpush3.bf16.msra.mxu0 %v1494_v1  ;;  %v1498_v5 = vld [vmem:[#allocation4 + $0x10] sm:$0xff]   ;;  %v1499_v6 = vld [vmem:[#allocation4 + $0x58] sm:$0xff]   ;;  %v1504_v8 = vld [vmem:[#allocation4 + $0x80] sm:$0xff]  }
  0x71   : > { %1241 = vmatprep.subr.bf16.mxu0 %v1495_v2  ;;  %v1500_v7 = vld [vmem:[#allocation4 + $0x18] sm:$0xff]   ;;  %v1501_v9 = vld [vmem:[#allocation4 + $0x60] sm:$0xff]   ;;  %1309 = vmatprep.subr.bf16.mxu1 %v1504_v8  ;;  %v1507_v10 = vld [vmem:[#allocation4 + $0x88] sm:$0xff]  }
  0x72   : > { %1310 = vmatpush3.bf16.msra.mxu1 %v1504_v8  ;;  %v1502_v11 = vld [vmem:[#allocation4 + $0x20] sm:$0xff]   ;;  %v1503_v12 = vld [vmem:[#allocation4 + $0x68] sm:$0xff]   ;;  %v1510_v13 = vld [vmem:[#allocation4 + $0x90] sm:$0xff]  }
  0x73   : > { %1311 = vmatprep.subr.bf16.mxu1 %v1507_v10  ;;  %v1505_v14 = vld [vmem:[#allocation4 + $0x28] sm:$0xff]   ;;  %v417_v16 = vld [vmem:[%s1867_s11 + $0x20] sm:$0xff]  ;;  %v1506_v17 = vld [vmem:[#allocation4 + $0x70] sm:$0xff]  }
  0x74   : > { %1242 = vmatpush3.bf16.msra.mxu0 %v1496_v3  ;;  %v414_v15 = vld [vmem:[%s1867_s11 + $0x8] sm:$0xff]  ;;  %v1512_v19 = vld [vmem:[#allocation4 + $0x98] ss:$0 sps:$4 sm:$0x77]   ;;  %v415_v20 = vld [vmem:[%s1867_s11 + $0x10] sm:$0xff] }
  0x75   : > { %1243 = vmatprep.subr.bf16.mxu0 %v1497_v4  ;;  %v426_v18 = vpack.c.bf16 %v417_v16, %v414_v15  ;;  %v418_v21 = vld [vmem:[%s1867_s11 + $0x28] sm:$0xff]  ;;  %v421_v23 = vld [vmem:[%s1867_s11 + $0x40] sm:$0xff]  ;;  %v424_v24 = vld [vmem:[%s1867_s11 + $0x58] sm:$0xff]  ;;  %v603_v27 = vsel %vm601_vm0, %v1512_v19, 0 }
  0x76   : > { %1312 = vmatpush3.bf16.msra.mxu1 %v1507_v10  ;;  %v427_v22 = vpack.c.bf16 %v418_v21, %v415_v20  ;;  %v1508_v25 = vld [vmem:[#allocation4 + $0x30] sm:$0xff]   ;;  %v1509_v26 = vld [vmem:[#allocation4 + $0x78] sm:$0xff]   ;;  %v1513_v28 = vld [vmem:[%s1965_s3] sm:$0xff]   ;;  %v430_v32 = vpack.c.bf16 %v424_v24, %v421_v23 }
  0x77   : > { %1313 = vmatprep.subr.bf16.mxu1 %v1510_v13  ;;  %637 = vmatprep.mubr.bf16.mxu0 %v426_v18  ;;  %v1511_v29 = vld [vmem:[#allocation4 + $0x38] sm:$0xff]   ;;  %v413_v30 = vld [vmem:[%s1867_s11] sm:$0xff]  ;;  %v423_v34 = vld [vmem:[%s1867_s11 + $0x50] sm:$0xff] }
  0x78   : > { %1244 = vmatpush3.bf16.msra.mxu0 %v1498_v5  ;;  %1317 = vmatprep.mubr.msk.bf16.mxu1 %vm594_vm1, %v427_v22  ;;  %v416_v31 = vld [vmem:[%s1867_s11 + $0x18] sm:$0xff]  ;;  %v1514_v35 = vld [vmem:[%s1965_s3 + $0x8] sm:$0xff]   ;;  %v1515_v36 = vld [vmem:[%s1965_s3 + $0x10] sm:$0xff]  }
  0x79   : > { %1245 = vmatprep.subr.bf16.mxu0 %v1499_v6  ;;  %v420_v33 = vld [vmem:[%s1867_s11 + $0x38] sm:$0xff]  ;;  %v425_v37 = vpack.c.bf16 %v416_v31, %v413_v30  ;;  %v419_v39 = vld [vmem:[%s1867_s11 + $0x30] sm:$0xff]  ;;  %v422_v40 = vld [vmem:[%s1867_s11 + $0x48] sm:$0xff]  ;;  %s1175_s11 = sshll.u32 %s1988_s22, 2 }
  0x7a   : > { %1314 = vmatpush3.bf16.msra.mxu1 %v1510_v13  ;;  %v429_v38 = vpack.c.bf16 %v423_v34, %v420_v33  ;;  %v428_v41 = vpack.c.bf16 %v422_v40, %v419_v39  ;;  %v1516_v42 = vld [vmem:[%s1965_s3 + $0x18] sm:$0xff]   ;;  %v1517_v43 = vld [vmem:[%s1965_s3 + $0x20] sm:$0xff]   ;;  %v1518_v44 = vld [vmem:[%s1965_s3 + $0x28] sm:$0xff]   ;;  %p407_p7 = scmp.lt.s32.totalorder %s1175_s11, 7 }
  0x7b   : > { %1423 = vmatprep.subr.msk.bf16.mxu1 %vm601_vm0, %v1512_v19  ;;  %v1519_v45 = vld [vmem:[%s1965_s3 + $0x30] sm:$0xff]   ;;  %v1520_v46 = vld [vmem:[%s1965_s3 + $0x38] sm:$0xff]   ;;  %v1521_v47 = vld [vmem:[%s1967_s5] sm:$0xff]  }
  0x7c   : > { %1246 = vmatpush3.bf16.msra.mxu0 %v1500_v7  ;;  %v1177_v54 = vld [vmem:[%s1964_s2] ss:$0 sm:$0xff]  ;;  %v1522_v15 = vld [vmem:[%s1967_s5 + $0x8] sm:$0xff]   ;;  %v1523_v16 = vld [vmem:[%s1967_s5 + $0x10] sm:$0xff]   ;;  %s1994_s11 = smov (!%p407_p7, %s1175_s11), 7 }
  0x7d   : > { %1247 = vmatprep.subr.bf16.mxu0 %v1501_v9  ;;  %v934_v18 = vld [vmem:[#allocation6] sm:$0xff]  ;;  %v935_v19 = vld [vmem:[#allocation6 + $0x8] sm:$0xff]  ;;  %v936_v20 = vld [vmem:[#allocation6 + $0x10] sm:$0xff]  ;;  %s1176_s25 = sshll.u32 %s1994_s11, 2 }
  0x7e   : > { %1316 = vmatpush3.bf16.msra.mxu1 %v603_v27  ;;  %v1391_v21 = vpack.c.bf16 %v935_v19, %v934_v18  ;;  %v937_v22 = vld [vmem:[#allocation6 + $0x18] sm:$0xff]  ;;  %v938_v24 = vld [vmem:[#allocation6 + $0x20] sm:$0xff]  ;;  %v940_v27 = vld [vmem:[#allocation6 + $0x30] sm:$0xff]  ;;  %s410_s26 = scalar_lea.vmem %s1972_s10, %s1176_s25 }
  0x7f   : > { %1321 = vmatprep.subr.bf16.mxu1 %v1513_v28  ;;  %v1395_v23 = vpack.c.bf16 %v937_v22, %v936_v20  ;;  %v942_v30 = vld [vmem:[#allocation6 + $0x40] sm:$0xff]  ;;  %v943_v31 = vld [vmem:[#allocation6 + $0x48] sm:$0xff]  ;;  %v944_v33 = vld [vmem:[#allocation6 + $0x50] sm:$0xff] }
  0x80   : > { %1248 = vmatpush3.bf16.msra.mxu0 %v1502_v11  ;;  %v945_v34 = vld [vmem:[#allocation6 + $0x58] sm:$0xff] }
  0x81   : > { %1249 = vmatprep.subr.bf16.mxu0 %v1503_v12  ;;  %1318 = vmatmul.mubr.msk.bf16.vlgmr.msra.gmra.mrb[0].mxu1 %vm594_vm1, %v430_v32  ;;  %v1407_v32 = vpack.c.bf16 %v943_v31, %v942_v30 }
  0x82   : > { %1322 = vmatpush3.bf16.msra.mxu1 %v1513_v28  ;;  %v941_v28 = vld [vmem:[#allocation6 + $0x38] sm:$0xff] }
  0x83   : > { %1323 = vmatprep.subr.bf16.mxu1 %v1514_v35 }
  0x84   : > { %1250 = vmatpush3.bf16.msra.mxu0 %v1505_v14 }
  0x85   : > { %1251 = vmatprep.subr.bf16.mxu0 %v1506_v17  ;;  %v1524_v17 = vld [vmem:[%s1967_s5 + $0x18] sm:$0xff]  }
  0x86   : > { %1324 = vmatpush3.bf16.msra.mxu1 %v1514_v35  ;;  %v1411_v35 = vpack.c.bf16 %v945_v34, %v944_v33 }
  0x87   : > { %1325 = vmatprep.subr.bf16.mxu1 %v1515_v36 }
  0x88   : > { %1252 = vmatpush3.bf16.msra.mxu0 %v1508_v25  ;;  %v939_v25 = vld [vmem:[#allocation6 + $0x28] sm:$0xff] }
  0x89   : > { %1253 = vmatprep.subr.bf16.mxu0 %v1509_v26  ;;  %v1399_v26 = vpack.c.bf16 %v939_v25, %v938_v24 }
  0x8a   : > { %1326 = vmatpush3.bf16.msra.mxu1 %v1515_v36  ;;  %v1200_v36 = vld [vmem:[%s1966_s4] ss:$0 sm:$0xff] }
  0x8b   : > { %1327 = vmatprep.subr.bf16.mxu1 %v1516_v42 }
  0x8c   : > { %1254 = vmatpush3.bf16.msra.mxu0 %v1511_v29  ;;  %v1403_v29 = vpack.c.bf16 %v941_v28, %v940_v27 }
  0x8d   : > { %1392 = vmatprep.subr.bf16.mxu0 %v1391_v21 }
  0x8e   : > { %1328 = vmatpush3.bf16.msra.mxu1 %v1516_v42 }
  0x8f   : > { %638 = vmatmul.mubr.bf16.vlgmr.msra.gmra.mrb[0].mxu0 %v425_v37  ;;  %1329 = vmatprep.subr.bf16.mxu1 %v1517_v43 }
  0x90   : > { %645 = vmatprep.mubr.bf16.mxu0 %v429_v38  ;;  %1394 = vmatpush3.bf16.msra.mxu0 %v1391_v21 }
  0x91   : > { %1396 = vmatprep.subr.bf16.mxu0 %v1395_v23 }
  0x92   : > { %1330 = vmatpush3.bf16.msra.mxu1 %v1517_v43 }
  0x93   : > { %1331 = vmatprep.subr.bf16.mxu1 %v1518_v44 }
  0x94   : > { %1398 = vmatpush3.bf16.msra.mxu0 %v1395_v23 }
  0x95   : > { %1400 = vmatprep.subr.bf16.mxu0 %v1399_v26 }
  0x96   : > { %1332 = vmatpush3.bf16.msra.mxu1 %v1518_v44 }
  0x97   : > { %646 = vmatmul.mubr.bf16.gmra.mrb[4].mxu0 %v428_v41  ;;  %1333 = vmatprep.subr.bf16.mxu1 %v1519_v45 }
  0x98   : > { %1402 = vmatpush3.bf16.msra.mxu0 %v1399_v26 }
  0x99   : > { %1404 = vmatprep.subr.bf16.mxu0 %v1403_v29 }
  0x9a   : > { %1334 = vmatpush3.bf16.msra.mxu1 %v1519_v45 }
  0x9b   : > { %1335 = vmatprep.subr.bf16.mxu1 %v1520_v46 }
  0x9c   : > { %1406 = vmatpush3.bf16.msra.mxu0 %v1403_v29 }
  0x9d   : > { %1408 = vmatprep.subr.bf16.mxu0 %v1407_v32 }
  0x9e   : > { %1336 = vmatpush3.bf16.msra.mxu1 %v1520_v46 }
  0x9f   : > { %1341 = vmatprep.subr.bf16.mxu1 %v1521_v47 }
  0xa0   : > { %1410 = vmatpush3.bf16.msra.mxu0 %v1407_v32 }
  0xa1   : > { %1412 = vmatprep.subr.bf16.mxu0 %v1411_v35 }
  0xa4   : > { %1414 = vmatpush3.bf16.msra.mxu0 %v1411_v35 }
 0x154   : > { %v1319_v48 = vpop.f32.mrb[0].mxu1 }
 0x155   : > { %v688_v49 = vpop.f32.mrb[1].mxu1 }
 0x156   : > { %v1320_v50 = vpop.f32.mrb[2].mxu1 }
 0x157   : > { %v691_v51 = vpop.f32.mrb[3].mxu1 }
 0x162   : > { %v1255_v52 = vpop.f32.mrb[0].mxu0 }
 0x163   : > { %v1256_v53 = vpop.f32.mrb[1].mxu0 }
 0x164   : > { %v1257_v55 = vadd.f32 %v1256_v53, %v1255_v52  ;;  %v1258_v56 = vpop.f32.mrb[2].mxu0  ;;  %v947_v52 = vld [vmem:[#allocation6 + $0x68] sm:$0xff] }
 0x165   : > { %v1259_v57 = vpop.f32.mrb[3].mxu0 }
 0x166   : > { %v1260_v58 = vadd.f32 %v1259_v57, %v1258_v56  ;;  %v640_v59 = vadd.f32 %v1257_v55, %v1177_v54  ;;  %v949_v55 = vld [vmem:[#allocation6 + $0x78] sm:$0xff]  ;;  %v1209_v57 = vld [vmem:[%s1968_s6] ss:$0 sm:$0xff] }
 0x168   : > { %v689_v60 = vadd.f32 %v688_v49, %v640_v59  ;;  %v643_v61 = vadd.f32 %v1260_v58, %v1177_v54 }
 0x16a   : > { %v692_v62 = vadd.f32 %v691_v51, %v643_v61  ;;  %v1261_v63 = vpop.f32.mrb[4].mxu0  ;;  %v703_v1 = vmax.f32 %v689_v60, 0.0  ;;  %v946_v51 = vld [vmem:[#allocation6 + $0x60] sm:$0xff] }
 0x16b   : > { %v1262_v0 = vpop.f32.mrb[5].mxu0  ;;  %v1415_v53 = vpack.c.bf16 %v947_v52, %v946_v51 }
 0x16c   : > { %v704_v2 = vmax.f32 %v692_v62, 0.0  ;;  %v1263_v3 = vadd.f32 %v1262_v0, %v1261_v63  ;;  %v1264_v4 = vpop.f32.mrb[6].mxu0 }
 0x16d   : > { %v1265_v5 = vpop.f32.mrb[7].mxu0  ;;  %1416 = vmatprep.subr.bf16.mxu0 %v1415_v53 }
 0x16e   : > { %v707_v6 = vpack.c.bf16 %v704_v2, %v703_v1  ;;  %v648_v7 = vadd.f32 %v1263_v3, %v1177_v54  ;;  %v1266_v8 = vadd.f32 %v1265_v5, %v1264_v4  ;;  %1418 = vmatpush3.bf16.msra.mxu0 %v1415_v53 }
 0x170   : > { %v697_v9 = vadd.f32 %v1319_v48, %v648_v7  ;;  %v651_v10 = vadd.f32 %v1266_v8, %v1177_v54  ;;  %1337 = vmatprep.mubr.bf16.mxu1 %v707_v6  ;;  %v948_v54 = vld [vmem:[#allocation6 + $0x70] sm:$0xff]  ;;  %v1216_v6 = vld [vmem:[%s1970_s8] ss:$0 sm:$0xff] }
 0x171   : > { %v1419_v56 = vpack.c.bf16 %v949_v55, %v948_v54  ;;  %v1217_v7 = vld [vmem:[%s1971_s9] ss:$0 sm:$0xff] }
 0x172   : > { %v700_v11 = vadd.f32 %v1320_v50, %v651_v10  ;;  %v705_v12 = vmax.f32 %v697_v9, 0.0 }
 0x173   : > { %1420 = vmatprep.subr.bf16.mxu0 %v1419_v56 }
 0x174   : > { %v706_v13 = vmax.f32 %v700_v11, 0.0  ;;  %1422 = vmatpush3.bf16.msra.mxu0 %v1419_v56 }
 0x176   : > { %v708_v14 = vpack.c.bf16 %v706_v13, %v705_v12 }
 0x178   : > { %1338 = vmatmul.mubr.bf16.vlgmr.msra.gmra.mrb[4].mxu1 %v708_v14 }
 0x179   : > { %1342 = vmatpush3.bf16.msra.mxu1 %v1521_v47 }
 0x17a   : > { %1343 = vmatprep.subr.bf16.mxu1 %v1522_v15 }
 0x17d   : > { %1344 = vmatpush3.bf16.msra.mxu1 %v1522_v15 }
 0x17e   : > { %1345 = vmatprep.subr.bf16.mxu1 %v1523_v16 }
 0x181   : > { %1346 = vmatpush3.bf16.msra.mxu1 %v1523_v16 }
 0x182   : > { %1347 = vmatprep.subr.bf16.mxu1 %v1524_v17 }
 0x185   : > { %1348 = vmatpush3.bf16.msra.mxu1 %v1524_v17 }
 0x24b   : > { %v1339_v37 = vpop.f32.mrb[4].mxu1 }
 0x24c   : > { %v823_v38 = vadd.f32 %v1339_v37, %v1200_v36  ;;  %v814_v39 = vpop.f32.mrb[5].mxu1 }
 0x24d   : > { %v815_v40 = vadd.f32 %v1200_v36, %v814_v39  ;;  %v1340_v41 = vpop.f32.mrb[6].mxu1 }
 0x24e   : > { %v826_v42 = vadd.f32 %v1340_v41, %v1200_v36  ;;  %v817_v43 = vpop.f32.mrb[7].mxu1  ;;  %v831_v45 = vmax.f32 %v823_v38, 0.0 }
 0x24f   : > { %v818_v44 = vadd.f32 %v1200_v36, %v817_v43  ;;  %v829_v47 = vmax.f32 %v815_v40, 0.0 }
 0x250   : > { %v832_v46 = vmax.f32 %v826_v42, 0.0 }
 0x251   : > { %v830_v48 = vmax.f32 %v818_v44, 0.0 }
 0x252   : > { %v834_v49 = vpack.c.bf16 %v832_v46, %v831_v45 }
 0x253   : > { %v833_v50 = vpack.c.bf16 %v830_v48, %v829_v47 }
 0x255   : > { %1349 = vmatprep.mubr.msk.bf16.mxu1 %vm874_vm2, %v833_v50 }
 0x256   : > { %1350 = vmatmul.mubr.msk.bf16.vlgmr.msra.gmra.mrb[8].mxu1 %vm874_vm2, %v834_v49 }
 0x329   : > { %v1351_v58 = vpop.f32.mrb[8].mxu1 }
 0x32a   : > { %v915_v59 = vpop.f32.mrb[9].mxu1  ;;  %v924_v62 = vadd.f32 %v1351_v58, %v1209_v57 }
 0x32b   : > { %v916_v60 = vadd.f32 %v1209_v57, %v915_v59  ;;  %v1352_v61 = vpop.f32.mrb[10].mxu1 }
 0x32c   : > { %v918_v63 = vpop.f32.mrb[11].mxu1  ;;  %v927_v2 = vadd.f32 %v1352_v61, %v1209_v57  ;;  %v932_v4 = vmax.f32 %v924_v62, 0.0  ;;  %v1051_v20 = vmul.f32 %v1217_v7, %v924_v62 }
 0x32d   : > { %v930_v0 = vmax.f32 %v916_v60, 0.0  ;;  %v919_v1 = vadd.f32 %v1209_v57, %v918_v63  ;;  %v1049_v12 = vmul.f32 %v1217_v7, %v916_v60 }
 0x32e   : > { %v933_v5 = vmax.f32 %v927_v2, 0.0  ;;  %v1052_v17 = vmul.f32 %v1217_v7, %v927_v2 }
 0x32f   : > { %v931_v3 = vmax.f32 %v919_v1, 0.0  ;;  %1385 = vmatprep.mubr.f32.mxu0 %v930_v0  ;;  %v1050_v9 = vmul.f32 %v1217_v7, %v919_v1 }
 0x331   : > { %1386 = vmatmul.mubr.f32.vlgmr.msra.gmra.mrb[8].mxu0 %v931_v3 }
 0x332   : > { %1388 = vmatprep.mubr.f32.mxu0 %v932_v4 }
 0x335   : > { %1389 = vmatmul.mubr.f32.gmra.mrb[10].mxu0 %v933_v5 }
 0x404   : > { %v1387_v8 = vpop.f32.mrb[8].mxu0 }
 0x405   : > { %v1029_v10 = vadd.f32 %v1387_v8, %v1216_v6  ;;  %v1023_v11 = vpop.f32.mrb[9].mxu0 }
 0x406   : > { %v1024_v13 = vadd.f32 %v1216_v6, %v1023_v11 }
 0x407   : > { %v1054_v14 = vadd.f32 %v1050_v9, %v1029_v10 }
 0x408   : > { %v1053_v15 = vadd.f32 %v1049_v12, %v1024_v13  ;;  %v1390_v16 = vpop.f32.mrb[10].mxu0 }
 0x409   : > { %v1039_v18 = vadd.f32 %v1390_v16, %v1216_v6  ;;  %v1033_v19 = vpop.f32.mrb[11].mxu0 }
 0x40a   : > { %v1231_v21 = vpack.c.bf16 %v1054_v14, %v1053_v15  ;;  %v1034_v22 = vadd.f32 %v1216_v6, %v1033_v19 }
 0x40b   : > { %v1056_v23 = vadd.f32 %v1052_v17, %v1039_v18 }
 0x40c   : > { %1232 = vst [vmem:[%s410_s26] sm:$0xff] %v1231_v21   ;;  %v1055_v24 = vadd.f32 %v1051_v20, %v1034_v22 }
 0x40e   : > { %v1236_v25 = vpack.c.bf16 %v1056_v23, %v1055_v24 }
 0x410   : > { %1238 = vst [vmem:[%s410_s26 + $0x8] sm:$0xff] %v1236_v25  }
 0x411 PF: > { %p21_p6 = scmp.ge.s32.totalorder %s1811_s27, 4   ;;  %s1989_s13 = smov %s1641_s14 }
 0x412   : > { %s1990_s14 = smov %s1645_s15  ;;  %s1991_s15 = smov %s1820_s30 }
 0x413   : > { %s1992_s16 = smov %s1811_s27  ;;  %23 = sbr.rel (!%p21_p6) target bundleno = 6 (0x6), region = 108 }
 0x41a   :  { %1099 = vsyncpa [#allocation3], 1 }
 0x41b   :  { %1101 = vsyncpa [#allocation3 + $0x1], 1 }
 0x41c   :  { %1102 = vsyncpa [#allocation5], 1 }

</bundles_post_ra>
